<compile_context>
chip_gen: v5e
topology: v5e:2x2
jax: 0.10.0
libtpu: 0.0.40
codegen_flags: <defaults>
</compile_context>

<pallas_src>
import jax
import jax.numpy as jnp
from jax.experimental import pallas as pl
from jax.experimental.pallas import tpu as pltpu

# Fixed by the PyTorch module.
IN_F, H1, H2, OUT_F = 2, 8, 9, 2

# Flat parameter layout: offsets into a single f32[P_LEN] SMEM array.
# Weights stay in PyTorch's [out_features, in_features] convention, row-major.
W1_OFF = 0                      # H1*IN_F  = 16
B1_OFF = W1_OFF + H1 * IN_F     # 16, H1   = 8
W2_OFF = B1_OFF + H1            # 24, H2*H1= 72
B2_OFF = W2_OFF + H2 * H1       # 96, H2   = 9
W3_OFF = B2_OFF + H2            # 105, OUT_F*H2 = 18
B3_OFF = W3_OFF + OUT_F * H2    # 123, OUT_F    = 2
P_USED = B3_OFF + OUT_F         # 125
P_LEN = 128                     # padded


def mlp_kernel(p_ref, x_ref, o_ref):
    # p_ref: f32[P_LEN]            in SMEM (resident across grid steps)
    # x_ref: f32[IN_F,  TB_S, 128] in VMEM (TB_S sublane blocks of the batch)
    # o_ref: f32[OUT_F, TB_S, 128] in VMEM
    def layer(planes, n_in, n_out, w_off, b_off, relu):
        outs = []
        for h in range(n_out):
            # y_h = sum_k w[h,k] * a_k + b_h   (scalar x plane FMAs, unrolled)
            acc = planes[0] * p_ref[w_off + h * n_in]
            for k in range(1, n_in):
                acc = acc + planes[k] * p_ref[w_off + h * n_in + k]
            acc = acc + p_ref[b_off + h]
            if relu:
                acc = jnp.maximum(acc, 0.0)
            outs.append(acc)
        return outs

    x = [x_ref[k] for k in range(IN_F)]            # IN_F planes of [TB_S, 128]
    h1 = layer(x,  IN_F, H1,    W1_OFF, B1_OFF, True)
    h2 = layer(h1, H1,   H2,    W2_OFF, B2_OFF, True)
    y  = layer(h2, H2,   OUT_F, W3_OFF, B3_OFF, False)
    for h in range(OUT_F):
        o_ref[h] = y[h]


def _choose_tile_sb(n_sb, max_sb=512):
    """Pick the batch tile in sublane blocks (units of 128 columns).

    Goals: big tiles (amortize per-step overhead), multiple of 8 sublane
    blocks (dense (8,128) tiling), >= 2 grid steps when the batch is large
    enough so v7x's two TensorCores both get work, and <= max_sb (512 blocks
    = 64K columns ~ 6.5 MiB working set) to stay inside v5e's VMEM budget.
    """
    if n_sb <= 8:
        return n_sb                       # single block == full (padded) dim
    tb = min(max_sb, n_sb)
    if tb == n_sb:                        # would be one giant step: split for megacore
        tb = max(8, (n_sb // 2) // 8 * 8)
    else:
        tb = max(8, tb // 8 * 8)
    return tb


def mlp_forward_fm(x_fm, params_flat, *, max_tile_cols=65536):
    """Fast path. x_fm: [IN_F, B] feature-major. Returns [OUT_F, B]."""
    f, b = x_fm.shape
    assert f == IN_F
    b_pad = ((b + 127) // 128) * 128
    if b_pad != b:
        x_fm = jnp.pad(x_fm, ((0, 0), (0, b_pad - b)))
    n_sb = b_pad // 128
    x3 = x_fm.reshape(IN_F, n_sb, 128)            # free row-major reshape
    tb_s = _choose_tile_sb(n_sb, max_tile_cols // 128)

    out3 = pl.pallas_call(
        mlp_kernel,
        out_shape=jax.ShapeDtypeStruct((OUT_F, n_sb, 128), jnp.float32),
        grid=(pl.cdiv(n_sb, tb_s),),
        in_specs=[
            pl.BlockSpec(memory_space=pltpu.MemorySpace.SMEM),      # params
            pl.BlockSpec((IN_F, tb_s, 128), lambda i: (0, i, 0)),   # x tiles
        ],
        out_specs=pl.BlockSpec((OUT_F, tb_s, 128), lambda i: (0, i, 0)),
        compiler_params=pltpu.CompilerParams(
            dimension_semantics=("parallel",)),
    )(params_flat, x3)

    out_fm = out3.reshape(OUT_F, n_sb * 128)      # free row-major reshape
    if b_pad != b:
        out_fm = out_fm[:, :b]
    return out_fm


def mlp_forward(x_bm, params_flat, **kw):
    """Compatibility path matching the PyTorch layout: [B, IN_F] -> [B, OUT_F].
    The transposes here are host-side XLA ops; prefer mlp_forward_fm."""
    return mlp_forward_fm(x_bm.T, params_flat, **kw).T


def init_params(key):
    # Mimic PyTorch nn.Linear default init: U(-k, k), k = 1/sqrt(fan_in).
    ks = jax.random.split(key, 6)

    def lin(kw, kb, fan_in, fan_out):
        bound = 1.0 / jnp.sqrt(jnp.float32(fan_in))
        w = jax.random.uniform(kw, (fan_out, fan_in), jnp.float32, -bound, bound)
        b = jax.random.uniform(kb, (fan_out,), jnp.float32, -bound, bound)
        return w, b

    w1, b1 = lin(ks[0], ks[1], IN_F, H1)
    w2, b2 = lin(ks[2], ks[3], H1, H2)
    w3, b3 = lin(ks[4], ks[5], H2, OUT_F)
    return w1, b1, w2, b2, w3, b3


def pack_params(w1, b1, w2, b2, w3, b3):
    flat = jnp.zeros((P_LEN,), jnp.float32)
    flat = flat.at[W1_OFF:W1_OFF + H1 * IN_F].set(w1.reshape(-1))
    flat = flat.at[B1_OFF:B1_OFF + H1].set(b1)
    flat = flat.at[W2_OFF:W2_OFF + H2 * H1].set(w2.reshape(-1))
    flat = flat.at[B2_OFF:B2_OFF + H2].set(b2)
    flat = flat.at[W3_OFF:W3_OFF + OUT_F * H2].set(w3.reshape(-1))
    flat = flat.at[B3_OFF:B3_OFF + OUT_F].set(b3)
    return flat


if __name__ == "__main__":
    key = jax.random.PRNGKey(0)
    k_x, k_p, k_x2 = jax.random.split(key, 3)

    w1, b1, w2, b2, w3, b3 = init_params(k_p)
    params = pack_params(w1, b1, w2, b2, w3, b3)

    def ref_fwd(x_bm):
        h = jnp.maximum(x_bm @ w1.T + b1, 0.0)
        h = jnp.maximum(h @ w2.T + b2, 0.0)
        return h @ w3.T + b3

    # Main check: feature-major fast path, batch a multiple of 128, 2 grid steps.
    batch = 4096
    x_fm = jax.random.normal(k_x, (IN_F, batch), dtype=jnp.float32)
    out_fm = jax.block_until_ready(jax.jit(mlp_forward_fm)(x_fm, params))
    assert out_fm.shape == (OUT_F, batch)
    assert jnp.allclose(out_fm.T, ref_fwd(x_fm.T), atol=1e-5, rtol=1e-5)

    # Ragged-batch check via the PyTorch-layout wrapper (exercises padding).
    batch2 = 1000
    x2_bm = jax.random.normal(k_x2, (batch2, IN_F), dtype=jnp.float32)
    out2_bm = jax.block_until_ready(mlp_forward(x2_bm, params))
    assert out2_bm.shape == (batch2, OUT_F)
    assert jnp.allclose(out2_bm, ref_fwd(x2_bm), atol=1e-5, rtol=1e-5)

    print("KERNEL_OK")
</pallas_src>

<mosaic_0001>
module attributes {stable_mosaic.version = 11 : i64} {
  func.func @mlp_kernel(%arg0: i32, %arg1: memref<128xf32, #tpu.memory_space<smem>>, %arg2: memref<2x16x128xf32, #tpu.memory_space<vmem>>, %arg3: memref<2x16x128xf32, #tpu.memory_space<vmem>>) attributes {dimension_semantics = [#tpu.dimension_semantics<parallel>], iteration_bounds = array<i64: 2>, scalar_prefetch = 0 : i64, scratch_operands = 0 : i64, tpu.core_type = #tpu.core_type<tc>, window_params = [{transform_indices = @transform_0, window_bounds = array<i64: 128>}, {transform_indices = @transform_1, window_bounds = array<i64: 2, 16, 128>}, {transform_indices = @transform_2, window_bounds = array<i64: 2, 16, 128>}]} {
    %c0 = arith.constant 0 : index
    %c0_0 = arith.constant 0 : index
    %c0_1 = arith.constant 0 : index
    %0 = vector.load %arg2[%c0, %c0_0, %c0_1] : memref<2x16x128xf32, #tpu.memory_space<vmem>>, vector<1x16x128xf32>
    %1 = vector.shape_cast %0 : vector<1x16x128xf32> to vector<16x128xf32>
    %c1 = arith.constant 1 : index
    %c0_2 = arith.constant 0 : index
    %c0_3 = arith.constant 0 : index
    %2 = vector.load %arg2[%c1, %c0_2, %c0_3] : memref<2x16x128xf32, #tpu.memory_space<vmem>>, vector<1x16x128xf32>
    %3 = vector.shape_cast %2 : vector<1x16x128xf32> to vector<16x128xf32>
    %c0_4 = arith.constant 0 : index
    %4 = memref.load %arg1[%c0_4] : memref<128xf32, #tpu.memory_space<smem>>
    %5 = vector.broadcast %4 : f32 to vector<16x128xf32>
    %6 = arith.mulf %1, %5 : vector<16x128xf32>
    %c1_5 = arith.constant 1 : index
    %7 = memref.load %arg1[%c1_5] : memref<128xf32, #tpu.memory_space<smem>>
    %8 = vector.broadcast %7 : f32 to vector<16x128xf32>
    %9 = arith.mulf %3, %8 : vector<16x128xf32>
    %10 = arith.addf %6, %9 : vector<16x128xf32>
    %c16 = arith.constant 16 : index
    %11 = memref.load %arg1[%c16] : memref<128xf32, #tpu.memory_space<smem>>
    %12 = vector.broadcast %11 : f32 to vector<16x128xf32>
    %13 = arith.addf %10, %12 : vector<16x128xf32>
    %cst = arith.constant 0.000000e+00 : f32
    %14 = vector.broadcast %cst : f32 to vector<16x128xf32>
    %15 = arith.maximumf %13, %14 : vector<16x128xf32>
    %c2 = arith.constant 2 : index
    %16 = memref.load %arg1[%c2] : memref<128xf32, #tpu.memory_space<smem>>
    %17 = vector.broadcast %16 : f32 to vector<16x128xf32>
    %18 = arith.mulf %1, %17 : vector<16x128xf32>
    %c3 = arith.constant 3 : index
    %19 = memref.load %arg1[%c3] : memref<128xf32, #tpu.memory_space<smem>>
    %20 = vector.broadcast %19 : f32 to vector<16x128xf32>
    %21 = arith.mulf %3, %20 : vector<16x128xf32>
    %22 = arith.addf %18, %21 : vector<16x128xf32>
    %c17 = arith.constant 17 : index
    %23 = memref.load %arg1[%c17] : memref<128xf32, #tpu.memory_space<smem>>
    %24 = vector.broadcast %23 : f32 to vector<16x128xf32>
    %25 = arith.addf %22, %24 : vector<16x128xf32>
    %cst_6 = arith.constant 0.000000e+00 : f32
    %26 = vector.broadcast %cst_6 : f32 to vector<16x128xf32>
    %27 = arith.maximumf %25, %26 : vector<16x128xf32>
    %c4 = arith.constant 4 : index
    %28 = memref.load %arg1[%c4] : memref<128xf32, #tpu.memory_space<smem>>
    %29 = vector.broadcast %28 : f32 to vector<16x128xf32>
    %30 = arith.mulf %1, %29 : vector<16x128xf32>
    %c5 = arith.constant 5 : index
    %31 = memref.load %arg1[%c5] : memref<128xf32, #tpu.memory_space<smem>>
    %32 = vector.broadcast %31 : f32 to vector<16x128xf32>
    %33 = arith.mulf %3, %32 : vector<16x128xf32>
    %34 = arith.addf %30, %33 : vector<16x128xf32>
    %c18 = arith.constant 18 : index
    %35 = memref.load %arg1[%c18] : memref<128xf32, #tpu.memory_space<smem>>
    %36 = vector.broadcast %35 : f32 to vector<16x128xf32>
    %37 = arith.addf %34, %36 : vector<16x128xf32>
    %cst_7 = arith.constant 0.000000e+00 : f32
    %38 = vector.broadcast %cst_7 : f32 to vector<16x128xf32>
    %39 = arith.maximumf %37, %38 : vector<16x128xf32>
    %c6 = arith.constant 6 : index
    %40 = memref.load %arg1[%c6] : memref<128xf32, #tpu.memory_space<smem>>
    %41 = vector.broadcast %40 : f32 to vector<16x128xf32>
    %42 = arith.mulf %1, %41 : vector<16x128xf32>
    %c7 = arith.constant 7 : index
    %43 = memref.load %arg1[%c7] : memref<128xf32, #tpu.memory_space<smem>>
    %44 = vector.broadcast %43 : f32 to vector<16x128xf32>
    %45 = arith.mulf %3, %44 : vector<16x128xf32>
    %46 = arith.addf %42, %45 : vector<16x128xf32>
    %c19 = arith.constant 19 : index
    %47 = memref.load %arg1[%c19] : memref<128xf32, #tpu.memory_space<smem>>
    %48 = vector.broadcast %47 : f32 to vector<16x128xf32>
    %49 = arith.addf %46, %48 : vector<16x128xf32>
    %cst_8 = arith.constant 0.000000e+00 : f32
    %50 = vector.broadcast %cst_8 : f32 to vector<16x128xf32>
    %51 = arith.maximumf %49, %50 : vector<16x128xf32>
    %c8 = arith.constant 8 : index
    %52 = memref.load %arg1[%c8] : memref<128xf32, #tpu.memory_space<smem>>
    %53 = vector.broadcast %52 : f32 to vector<16x128xf32>
    %54 = arith.mulf %1, %53 : vector<16x128xf32>
    %c9 = arith.constant 9 : index
    %55 = memref.load %arg1[%c9] : memref<128xf32, #tpu.memory_space<smem>>
    %56 = vector.broadcast %55 : f32 to vector<16x128xf32>
    %57 = arith.mulf %3, %56 : vector<16x128xf32>
    %58 = arith.addf %54, %57 : vector<16x128xf32>
    %c20 = arith.constant 20 : index
    %59 = memref.load %arg1[%c20] : memref<128xf32, #tpu.memory_space<smem>>
    %60 = vector.broadcast %59 : f32 to vector<16x128xf32>
    %61 = arith.addf %58, %60 : vector<16x128xf32>
    %cst_9 = arith.constant 0.000000e+00 : f32
    %62 = vector.broadcast %cst_9 : f32 to vector<16x128xf32>
    %63 = arith.maximumf %61, %62 : vector<16x128xf32>
    %c10 = arith.constant 10 : index
    %64 = memref.load %arg1[%c10] : memref<128xf32, #tpu.memory_space<smem>>
    %65 = vector.broadcast %64 : f32 to vector<16x128xf32>
    %66 = arith.mulf %1, %65 : vector<16x128xf32>
    %c11 = arith.constant 11 : index
    %67 = memref.load %arg1[%c11] : memref<128xf32, #tpu.memory_space<smem>>
    %68 = vector.broadcast %67 : f32 to vector<16x128xf32>
    %69 = arith.mulf %3, %68 : vector<16x128xf32>
    %70 = arith.addf %66, %69 : vector<16x128xf32>
    %c21 = arith.constant 21 : index
    %71 = memref.load %arg1[%c21] : memref<128xf32, #tpu.memory_space<smem>>
    %72 = vector.broadcast %71 : f32 to vector<16x128xf32>
    %73 = arith.addf %70, %72 : vector<16x128xf32>
    %cst_10 = arith.constant 0.000000e+00 : f32
    %74 = vector.broadcast %cst_10 : f32 to vector<16x128xf32>
    %75 = arith.maximumf %73, %74 : vector<16x128xf32>
    %c12 = arith.constant 12 : index
    %76 = memref.load %arg1[%c12] : memref<128xf32, #tpu.memory_space<smem>>
    %77 = vector.broadcast %76 : f32 to vector<16x128xf32>
    %78 = arith.mulf %1, %77 : vector<16x128xf32>
    %c13 = arith.constant 13 : index
    %79 = memref.load %arg1[%c13] : memref<128xf32, #tpu.memory_space<smem>>
    %80 = vector.broadcast %79 : f32 to vector<16x128xf32>
    %81 = arith.mulf %3, %80 : vector<16x128xf32>
    %82 = arith.addf %78, %81 : vector<16x128xf32>
    %c22 = arith.constant 22 : index
    %83 = memref.load %arg1[%c22] : memref<128xf32, #tpu.memory_space<smem>>
    %84 = vector.broadcast %83 : f32 to vector<16x128xf32>
    %85 = arith.addf %82, %84 : vector<16x128xf32>
    %cst_11 = arith.constant 0.000000e+00 : f32
    %86 = vector.broadcast %cst_11 : f32 to vector<16x128xf32>
    %87 = arith.maximumf %85, %86 : vector<16x128xf32>
    %c14 = arith.constant 14 : index
    %88 = memref.load %arg1[%c14] : memref<128xf32, #tpu.memory_space<smem>>
    %89 = vector.broadcast %88 : f32 to vector<16x128xf32>
    %90 = arith.mulf %1, %89 : vector<16x128xf32>
    %c15 = arith.constant 15 : index
    %91 = memref.load %arg1[%c15] : memref<128xf32, #tpu.memory_space<smem>>
    %92 = vector.broadcast %91 : f32 to vector<16x128xf32>
    %93 = arith.mulf %3, %92 : vector<16x128xf32>
    %94 = arith.addf %90, %93 : vector<16x128xf32>
    %c23 = arith.constant 23 : index
    %95 = memref.load %arg1[%c23] : memref<128xf32, #tpu.memory_space<smem>>
    %96 = vector.broadcast %95 : f32 to vector<16x128xf32>
    %97 = arith.addf %94, %96 : vector<16x128xf32>
    %cst_12 = arith.constant 0.000000e+00 : f32
    %98 = vector.broadcast %cst_12 : f32 to vector<16x128xf32>
    %99 = arith.maximumf %97, %98 : vector<16x128xf32>
    %c24 = arith.constant 24 : index
    %100 = memref.load %arg1[%c24] : memref<128xf32, #tpu.memory_space<smem>>
    %101 = vector.broadcast %100 : f32 to vector<16x128xf32>
    %102 = arith.mulf %15, %101 : vector<16x128xf32>
    %c25 = arith.constant 25 : index
    %103 = memref.load %arg1[%c25] : memref<128xf32, #tpu.memory_space<smem>>
    %104 = vector.broadcast %103 : f32 to vector<16x128xf32>
    %105 = arith.mulf %27, %104 : vector<16x128xf32>
    %106 = arith.addf %102, %105 : vector<16x128xf32>
    %c26 = arith.constant 26 : index
    %107 = memref.load %arg1[%c26] : memref<128xf32, #tpu.memory_space<smem>>
    %108 = vector.broadcast %107 : f32 to vector<16x128xf32>
    %109 = arith.mulf %39, %108 : vector<16x128xf32>
    %110 = arith.addf %106, %109 : vector<16x128xf32>
    %c27 = arith.constant 27 : index
    %111 = memref.load %arg1[%c27] : memref<128xf32, #tpu.memory_space<smem>>
    %112 = vector.broadcast %111 : f32 to vector<16x128xf32>
    %113 = arith.mulf %51, %112 : vector<16x128xf32>
    %114 = arith.addf %110, %113 : vector<16x128xf32>
    %c28 = arith.constant 28 : index
    %115 = memref.load %arg1[%c28] : memref<128xf32, #tpu.memory_space<smem>>
    %116 = vector.broadcast %115 : f32 to vector<16x128xf32>
    %117 = arith.mulf %63, %116 : vector<16x128xf32>
    %118 = arith.addf %114, %117 : vector<16x128xf32>
    %c29 = arith.constant 29 : index
    %119 = memref.load %arg1[%c29] : memref<128xf32, #tpu.memory_space<smem>>
    %120 = vector.broadcast %119 : f32 to vector<16x128xf32>
    %121 = arith.mulf %75, %120 : vector<16x128xf32>
    %122 = arith.addf %118, %121 : vector<16x128xf32>
    %c30 = arith.constant 30 : index
    %123 = memref.load %arg1[%c30] : memref<128xf32, #tpu.memory_space<smem>>
    %124 = vector.broadcast %123 : f32 to vector<16x128xf32>
    %125 = arith.mulf %87, %124 : vector<16x128xf32>
    %126 = arith.addf %122, %125 : vector<16x128xf32>
    %c31 = arith.constant 31 : index
    %127 = memref.load %arg1[%c31] : memref<128xf32, #tpu.memory_space<smem>>
    %128 = vector.broadcast %127 : f32 to vector<16x128xf32>
    %129 = arith.mulf %99, %128 : vector<16x128xf32>
    %130 = arith.addf %126, %129 : vector<16x128xf32>
    %c96 = arith.constant 96 : index
    %131 = memref.load %arg1[%c96] : memref<128xf32, #tpu.memory_space<smem>>
    %132 = vector.broadcast %131 : f32 to vector<16x128xf32>
    %133 = arith.addf %130, %132 : vector<16x128xf32>
    %cst_13 = arith.constant 0.000000e+00 : f32
    %134 = vector.broadcast %cst_13 : f32 to vector<16x128xf32>
    %135 = arith.maximumf %133, %134 : vector<16x128xf32>
    %c32 = arith.constant 32 : index
    %136 = memref.load %arg1[%c32] : memref<128xf32, #tpu.memory_space<smem>>
    %137 = vector.broadcast %136 : f32 to vector<16x128xf32>
    %138 = arith.mulf %15, %137 : vector<16x128xf32>
    %c33 = arith.constant 33 : index
    %139 = memref.load %arg1[%c33] : memref<128xf32, #tpu.memory_space<smem>>
    %140 = vector.broadcast %139 : f32 to vector<16x128xf32>
    %141 = arith.mulf %27, %140 : vector<16x128xf32>
    %142 = arith.addf %138, %141 : vector<16x128xf32>
    %c34 = arith.constant 34 : index
    %143 = memref.load %arg1[%c34] : memref<128xf32, #tpu.memory_space<smem>>
    %144 = vector.broadcast %143 : f32 to vector<16x128xf32>
    %145 = arith.mulf %39, %144 : vector<16x128xf32>
    %146 = arith.addf %142, %145 : vector<16x128xf32>
    %c35 = arith.constant 35 : index
    %147 = memref.load %arg1[%c35] : memref<128xf32, #tpu.memory_space<smem>>
    %148 = vector.broadcast %147 : f32 to vector<16x128xf32>
    %149 = arith.mulf %51, %148 : vector<16x128xf32>
    %150 = arith.addf %146, %149 : vector<16x128xf32>
    %c36 = arith.constant 36 : index
    %151 = memref.load %arg1[%c36] : memref<128xf32, #tpu.memory_space<smem>>
    %152 = vector.broadcast %151 : f32 to vector<16x128xf32>
    %153 = arith.mulf %63, %152 : vector<16x128xf32>
    %154 = arith.addf %150, %153 : vector<16x128xf32>
    %c37 = arith.constant 37 : index
    %155 = memref.load %arg1[%c37] : memref<128xf32, #tpu.memory_space<smem>>
    %156 = vector.broadcast %155 : f32 to vector<16x128xf32>
    %157 = arith.mulf %75, %156 : vector<16x128xf32>
    %158 = arith.addf %154, %157 : vector<16x128xf32>
    %c38 = arith.constant 38 : index
    %159 = memref.load %arg1[%c38] : memref<128xf32, #tpu.memory_space<smem>>
    %160 = vector.broadcast %159 : f32 to vector<16x128xf32>
    %161 = arith.mulf %87, %160 : vector<16x128xf32>
    %162 = arith.addf %158, %161 : vector<16x128xf32>
    %c39 = arith.constant 39 : index
    %163 = memref.load %arg1[%c39] : memref<128xf32, #tpu.memory_space<smem>>
    %164 = vector.broadcast %163 : f32 to vector<16x128xf32>
    %165 = arith.mulf %99, %164 : vector<16x128xf32>
    %166 = arith.addf %162, %165 : vector<16x128xf32>
    %c97 = arith.constant 97 : index
    %167 = memref.load %arg1[%c97] : memref<128xf32, #tpu.memory_space<smem>>
    %168 = vector.broadcast %167 : f32 to vector<16x128xf32>
    %169 = arith.addf %166, %168 : vector<16x128xf32>
    %cst_14 = arith.constant 0.000000e+00 : f32
    %170 = vector.broadcast %cst_14 : f32 to vector<16x128xf32>
    %171 = arith.maximumf %169, %170 : vector<16x128xf32>
    %c40 = arith.constant 40 : index
    %172 = memref.load %arg1[%c40] : memref<128xf32, #tpu.memory_space<smem>>
    %173 = vector.broadcast %172 : f32 to vector<16x128xf32>
    %174 = arith.mulf %15, %173 : vector<16x128xf32>
    %c41 = arith.constant 41 : index
    %175 = memref.load %arg1[%c41] : memref<128xf32, #tpu.memory_space<smem>>
    %176 = vector.broadcast %175 : f32 to vector<16x128xf32>
    %177 = arith.mulf %27, %176 : vector<16x128xf32>
    %178 = arith.addf %174, %177 : vector<16x128xf32>
    %c42 = arith.constant 42 : index
    %179 = memref.load %arg1[%c42] : memref<128xf32, #tpu.memory_space<smem>>
    %180 = vector.broadcast %179 : f32 to vector<16x128xf32>
    %181 = arith.mulf %39, %180 : vector<16x128xf32>
    %182 = arith.addf %178, %181 : vector<16x128xf32>
    %c43 = arith.constant 43 : index
    %183 = memref.load %arg1[%c43] : memref<128xf32, #tpu.memory_space<smem>>
    %184 = vector.broadcast %183 : f32 to vector<16x128xf32>
    %185 = arith.mulf %51, %184 : vector<16x128xf32>
    %186 = arith.addf %182, %185 : vector<16x128xf32>
    %c44 = arith.constant 44 : index
    %187 = memref.load %arg1[%c44] : memref<128xf32, #tpu.memory_space<smem>>
    %188 = vector.broadcast %187 : f32 to vector<16x128xf32>
    %189 = arith.mulf %63, %188 : vector<16x128xf32>
    %190 = arith.addf %186, %189 : vector<16x128xf32>
    %c45 = arith.constant 45 : index
    %191 = memref.load %arg1[%c45] : memref<128xf32, #tpu.memory_space<smem>>
    %192 = vector.broadcast %191 : f32 to vector<16x128xf32>
    %193 = arith.mulf %75, %192 : vector<16x128xf32>
    %194 = arith.addf %190, %193 : vector<16x128xf32>
    %c46 = arith.constant 46 : index
    %195 = memref.load %arg1[%c46] : memref<128xf32, #tpu.memory_space<smem>>
    %196 = vector.broadcast %195 : f32 to vector<16x128xf32>
    %197 = arith.mulf %87, %196 : vector<16x128xf32>
    %198 = arith.addf %194, %197 : vector<16x128xf32>
    %c47 = arith.constant 47 : index
    %199 = memref.load %arg1[%c47] : memref<128xf32, #tpu.memory_space<smem>>
    %200 = vector.broadcast %199 : f32 to vector<16x128xf32>
    %201 = arith.mulf %99, %200 : vector<16x128xf32>
    %202 = arith.addf %198, %201 : vector<16x128xf32>
    %c98 = arith.constant 98 : index
    %203 = memref.load %arg1[%c98] : memref<128xf32, #tpu.memory_space<smem>>
    %204 = vector.broadcast %203 : f32 to vector<16x128xf32>
    %205 = arith.addf %202, %204 : vector<16x128xf32>
    %cst_15 = arith.constant 0.000000e+00 : f32
    %206 = vector.broadcast %cst_15 : f32 to vector<16x128xf32>
    %207 = arith.maximumf %205, %206 : vector<16x128xf32>
    %c48 = arith.constant 48 : index
    %208 = memref.load %arg1[%c48] : memref<128xf32, #tpu.memory_space<smem>>
    %209 = vector.broadcast %208 : f32 to vector<16x128xf32>
    %210 = arith.mulf %15, %209 : vector<16x128xf32>
    %c49 = arith.constant 49 : index
    %211 = memref.load %arg1[%c49] : memref<128xf32, #tpu.memory_space<smem>>
    %212 = vector.broadcast %211 : f32 to vector<16x128xf32>
    %213 = arith.mulf %27, %212 : vector<16x128xf32>
    %214 = arith.addf %210, %213 : vector<16x128xf32>
    %c50 = arith.constant 50 : index
    %215 = memref.load %arg1[%c50] : memref<128xf32, #tpu.memory_space<smem>>
    %216 = vector.broadcast %215 : f32 to vector<16x128xf32>
    %217 = arith.mulf %39, %216 : vector<16x128xf32>
    %218 = arith.addf %214, %217 : vector<16x128xf32>
    %c51 = arith.constant 51 : index
    %219 = memref.load %arg1[%c51] : memref<128xf32, #tpu.memory_space<smem>>
    %220 = vector.broadcast %219 : f32 to vector<16x128xf32>
    %221 = arith.mulf %51, %220 : vector<16x128xf32>
    %222 = arith.addf %218, %221 : vector<16x128xf32>
    %c52 = arith.constant 52 : index
    %223 = memref.load %arg1[%c52] : memref<128xf32, #tpu.memory_space<smem>>
    %224 = vector.broadcast %223 : f32 to vector<16x128xf32>
    %225 = arith.mulf %63, %224 : vector<16x128xf32>
    %226 = arith.addf %222, %225 : vector<16x128xf32>
    %c53 = arith.constant 53 : index
    %227 = memref.load %arg1[%c53] : memref<128xf32, #tpu.memory_space<smem>>
    %228 = vector.broadcast %227 : f32 to vector<16x128xf32>
    %229 = arith.mulf %75, %228 : vector<16x128xf32>
    %230 = arith.addf %226, %229 : vector<16x128xf32>
    %c54 = arith.constant 54 : index
    %231 = memref.load %arg1[%c54] : memref<128xf32, #tpu.memory_space<smem>>
    %232 = vector.broadcast %231 : f32 to vector<16x128xf32>
    %233 = arith.mulf %87, %232 : vector<16x128xf32>
    %234 = arith.addf %230, %233 : vector<16x128xf32>
    %c55 = arith.constant 55 : index
    %235 = memref.load %arg1[%c55] : memref<128xf32, #tpu.memory_space<smem>>
    %236 = vector.broadcast %235 : f32 to vector<16x128xf32>
    %237 = arith.mulf %99, %236 : vector<16x128xf32>
    %238 = arith.addf %234, %237 : vector<16x128xf32>
    %c99 = arith.constant 99 : index
    %239 = memref.load %arg1[%c99] : memref<128xf32, #tpu.memory_space<smem>>
    %240 = vector.broadcast %239 : f32 to vector<16x128xf32>
    %241 = arith.addf %238, %240 : vector<16x128xf32>
    %cst_16 = arith.constant 0.000000e+00 : f32
    %242 = vector.broadcast %cst_16 : f32 to vector<16x128xf32>
    %243 = arith.maximumf %241, %242 : vector<16x128xf32>
    %c56 = arith.constant 56 : index
    %244 = memref.load %arg1[%c56] : memref<128xf32, #tpu.memory_space<smem>>
    %245 = vector.broadcast %244 : f32 to vector<16x128xf32>
    %246 = arith.mulf %15, %245 : vector<16x128xf32>
    %c57 = arith.constant 57 : index
    %247 = memref.load %arg1[%c57] : memref<128xf32, #tpu.memory_space<smem>>
    %248 = vector.broadcast %247 : f32 to vector<16x128xf32>
    %249 = arith.mulf %27, %248 : vector<16x128xf32>
    %250 = arith.addf %246, %249 : vector<16x128xf32>
    %c58 = arith.constant 58 : index
    %251 = memref.load %arg1[%c58] : memref<128xf32, #tpu.memory_space<smem>>
    %252 = vector.broadcast %251 : f32 to vector<16x128xf32>
    %253 = arith.mulf %39, %252 : vector<16x128xf32>
    %254 = arith.addf %250, %253 : vector<16x128xf32>
    %c59 = arith.constant 59 : index
    %255 = memref.load %arg1[%c59] : memref<128xf32, #tpu.memory_space<smem>>
    %256 = vector.broadcast %255 : f32 to vector<16x128xf32>
    %257 = arith.mulf %51, %256 : vector<16x128xf32>
    %258 = arith.addf %254, %257 : vector<16x128xf32>
    %c60 = arith.constant 60 : index
    %259 = memref.load %arg1[%c60] : memref<128xf32, #tpu.memory_space<smem>>
    %260 = vector.broadcast %259 : f32 to vector<16x128xf32>
    %261 = arith.mulf %63, %260 : vector<16x128xf32>
    %262 = arith.addf %258, %261 : vector<16x128xf32>
    %c61 = arith.constant 61 : index
    %263 = memref.load %arg1[%c61] : memref<128xf32, #tpu.memory_space<smem>>
    %264 = vector.broadcast %263 : f32 to vector<16x128xf32>
    %265 = arith.mulf %75, %264 : vector<16x128xf32>
    %266 = arith.addf %262, %265 : vector<16x128xf32>
    %c62 = arith.constant 62 : index
    %267 = memref.load %arg1[%c62] : memref<128xf32, #tpu.memory_space<smem>>
    %268 = vector.broadcast %267 : f32 to vector<16x128xf32>
    %269 = arith.mulf %87, %268 : vector<16x128xf32>
    %270 = arith.addf %266, %269 : vector<16x128xf32>
    %c63 = arith.constant 63 : index
    %271 = memref.load %arg1[%c63] : memref<128xf32, #tpu.memory_space<smem>>
    %272 = vector.broadcast %271 : f32 to vector<16x128xf32>
    %273 = arith.mulf %99, %272 : vector<16x128xf32>
    %274 = arith.addf %270, %273 : vector<16x128xf32>
    %c100 = arith.constant 100 : index
    %275 = memref.load %arg1[%c100] : memref<128xf32, #tpu.memory_space<smem>>
    %276 = vector.broadcast %275 : f32 to vector<16x128xf32>
    %277 = arith.addf %274, %276 : vector<16x128xf32>
    %cst_17 = arith.constant 0.000000e+00 : f32
    %278 = vector.broadcast %cst_17 : f32 to vector<16x128xf32>
    %279 = arith.maximumf %277, %278 : vector<16x128xf32>
    %c64 = arith.constant 64 : index
    %280 = memref.load %arg1[%c64] : memref<128xf32, #tpu.memory_space<smem>>
    %281 = vector.broadcast %280 : f32 to vector<16x128xf32>
    %282 = arith.mulf %15, %281 : vector<16x128xf32>
    %c65 = arith.constant 65 : index
    %283 = memref.load %arg1[%c65] : memref<128xf32, #tpu.memory_space<smem>>
    %284 = vector.broadcast %283 : f32 to vector<16x128xf32>
    %285 = arith.mulf %27, %284 : vector<16x128xf32>
    %286 = arith.addf %282, %285 : vector<16x128xf32>
    %c66 = arith.constant 66 : index
    %287 = memref.load %arg1[%c66] : memref<128xf32, #tpu.memory_space<smem>>
    %288 = vector.broadcast %287 : f32 to vector<16x128xf32>
    %289 = arith.mulf %39, %288 : vector<16x128xf32>
    %290 = arith.addf %286, %289 : vector<16x128xf32>
    %c67 = arith.constant 67 : index
    %291 = memref.load %arg1[%c67] : memref<128xf32, #tpu.memory_space<smem>>
    %292 = vector.broadcast %291 : f32 to vector<16x128xf32>
    %293 = arith.mulf %51, %292 : vector<16x128xf32>
    %294 = arith.addf %290, %293 : vector<16x128xf32>
    %c68 = arith.constant 68 : index
    %295 = memref.load %arg1[%c68] : memref<128xf32, #tpu.memory_space<smem>>
    %296 = vector.broadcast %295 : f32 to vector<16x128xf32>
    %297 = arith.mulf %63, %296 : vector<16x128xf32>
    %298 = arith.addf %294, %297 : vector<16x128xf32>
    %c69 = arith.constant 69 : index
    %299 = memref.load %arg1[%c69] : memref<128xf32, #tpu.memory_space<smem>>
    %300 = vector.broadcast %299 : f32 to vector<16x128xf32>
    %301 = arith.mulf %75, %300 : vector<16x128xf32>
    %302 = arith.addf %298, %301 : vector<16x128xf32>
    %c70 = arith.constant 70 : index
    %303 = memref.load %arg1[%c70] : memref<128xf32, #tpu.memory_space<smem>>
    %304 = vector.broadcast %303 : f32 to vector<16x128xf32>
    %305 = arith.mulf %87, %304 : vector<16x128xf32>
    %306 = arith.addf %302, %305 : vector<16x128xf32>
    %c71 = arith.constant 71 : index
    %307 = memref.load %arg1[%c71] : memref<128xf32, #tpu.memory_space<smem>>
    %308 = vector.broadcast %307 : f32 to vector<16x128xf32>
    %309 = arith.mulf %99, %308 : vector<16x128xf32>
    %310 = arith.addf %306, %309 : vector<16x128xf32>
    %c101 = arith.constant 101 : index
    %311 = memref.load %arg1[%c101] : memref<128xf32, #tpu.memory_space<smem>>
    %312 = vector.broadcast %311 : f32 to vector<16x128xf32>
    %313 = arith.addf %310, %312 : vector<16x128xf32>
    %cst_18 = arith.constant 0.000000e+00 : f32
    %314 = vector.broadcast %cst_18 : f32 to vector<16x128xf32>
    %315 = arith.maximumf %313, %314 : vector<16x128xf32>
    %c72 = arith.constant 72 : index
    %316 = memref.load %arg1[%c72] : memref<128xf32, #tpu.memory_space<smem>>
    %317 = vector.broadcast %316 : f32 to vector<16x128xf32>
    %318 = arith.mulf %15, %317 : vector<16x128xf32>
    %c73 = arith.constant 73 : index
    %319 = memref.load %arg1[%c73] : memref<128xf32, #tpu.memory_space<smem>>
    %320 = vector.broadcast %319 : f32 to vector<16x128xf32>
    %321 = arith.mulf %27, %320 : vector<16x128xf32>
    %322 = arith.addf %318, %321 : vector<16x128xf32>
    %c74 = arith.constant 74 : index
    %323 = memref.load %arg1[%c74] : memref<128xf32, #tpu.memory_space<smem>>
    %324 = vector.broadcast %323 : f32 to vector<16x128xf32>
    %325 = arith.mulf %39, %324 : vector<16x128xf32>
    %326 = arith.addf %322, %325 : vector<16x128xf32>
    %c75 = arith.constant 75 : index
    %327 = memref.load %arg1[%c75] : memref<128xf32, #tpu.memory_space<smem>>
    %328 = vector.broadcast %327 : f32 to vector<16x128xf32>
    %329 = arith.mulf %51, %328 : vector<16x128xf32>
    %330 = arith.addf %326, %329 : vector<16x128xf32>
    %c76 = arith.constant 76 : index
    %331 = memref.load %arg1[%c76] : memref<128xf32, #tpu.memory_space<smem>>
    %332 = vector.broadcast %331 : f32 to vector<16x128xf32>
    %333 = arith.mulf %63, %332 : vector<16x128xf32>
    %334 = arith.addf %330, %333 : vector<16x128xf32>
    %c77 = arith.constant 77 : index
    %335 = memref.load %arg1[%c77] : memref<128xf32, #tpu.memory_space<smem>>
    %336 = vector.broadcast %335 : f32 to vector<16x128xf32>
    %337 = arith.mulf %75, %336 : vector<16x128xf32>
    %338 = arith.addf %334, %337 : vector<16x128xf32>
    %c78 = arith.constant 78 : index
    %339 = memref.load %arg1[%c78] : memref<128xf32, #tpu.memory_space<smem>>
    %340 = vector.broadcast %339 : f32 to vector<16x128xf32>
    %341 = arith.mulf %87, %340 : vector<16x128xf32>
    %342 = arith.addf %338, %341 : vector<16x128xf32>
    %c79 = arith.constant 79 : index
    %343 = memref.load %arg1[%c79] : memref<128xf32, #tpu.memory_space<smem>>
    %344 = vector.broadcast %343 : f32 to vector<16x128xf32>
    %345 = arith.mulf %99, %344 : vector<16x128xf32>
    %346 = arith.addf %342, %345 : vector<16x128xf32>
    %c102 = arith.constant 102 : index
    %347 = memref.load %arg1[%c102] : memref<128xf32, #tpu.memory_space<smem>>
    %348 = vector.broadcast %347 : f32 to vector<16x128xf32>
    %349 = arith.addf %346, %348 : vector<16x128xf32>
    %cst_19 = arith.constant 0.000000e+00 : f32
    %350 = vector.broadcast %cst_19 : f32 to vector<16x128xf32>
    %351 = arith.maximumf %349, %350 : vector<16x128xf32>
    %c80 = arith.constant 80 : index
    %352 = memref.load %arg1[%c80] : memref<128xf32, #tpu.memory_space<smem>>
    %353 = vector.broadcast %352 : f32 to vector<16x128xf32>
    %354 = arith.mulf %15, %353 : vector<16x128xf32>
    %c81 = arith.constant 81 : index
    %355 = memref.load %arg1[%c81] : memref<128xf32, #tpu.memory_space<smem>>
    %356 = vector.broadcast %355 : f32 to vector<16x128xf32>
    %357 = arith.mulf %27, %356 : vector<16x128xf32>
    %358 = arith.addf %354, %357 : vector<16x128xf32>
    %c82 = arith.constant 82 : index
    %359 = memref.load %arg1[%c82] : memref<128xf32, #tpu.memory_space<smem>>
    %360 = vector.broadcast %359 : f32 to vector<16x128xf32>
    %361 = arith.mulf %39, %360 : vector<16x128xf32>
    %362 = arith.addf %358, %361 : vector<16x128xf32>
    %c83 = arith.constant 83 : index
    %363 = memref.load %arg1[%c83] : memref<128xf32, #tpu.memory_space<smem>>
    %364 = vector.broadcast %363 : f32 to vector<16x128xf32>
    %365 = arith.mulf %51, %364 : vector<16x128xf32>
    %366 = arith.addf %362, %365 : vector<16x128xf32>
    %c84 = arith.constant 84 : index
    %367 = memref.load %arg1[%c84] : memref<128xf32, #tpu.memory_space<smem>>
    %368 = vector.broadcast %367 : f32 to vector<16x128xf32>
    %369 = arith.mulf %63, %368 : vector<16x128xf32>
    %370 = arith.addf %366, %369 : vector<16x128xf32>
    %c85 = arith.constant 85 : index
    %371 = memref.load %arg1[%c85] : memref<128xf32, #tpu.memory_space<smem>>
    %372 = vector.broadcast %371 : f32 to vector<16x128xf32>
    %373 = arith.mulf %75, %372 : vector<16x128xf32>
    %374 = arith.addf %370, %373 : vector<16x128xf32>
    %c86 = arith.constant 86 : index
    %375 = memref.load %arg1[%c86] : memref<128xf32, #tpu.memory_space<smem>>
    %376 = vector.broadcast %375 : f32 to vector<16x128xf32>
    %377 = arith.mulf %87, %376 : vector<16x128xf32>
    %378 = arith.addf %374, %377 : vector<16x128xf32>
    %c87 = arith.constant 87 : index
    %379 = memref.load %arg1[%c87] : memref<128xf32, #tpu.memory_space<smem>>
    %380 = vector.broadcast %379 : f32 to vector<16x128xf32>
    %381 = arith.mulf %99, %380 : vector<16x128xf32>
    %382 = arith.addf %378, %381 : vector<16x128xf32>
    %c103 = arith.constant 103 : index
    %383 = memref.load %arg1[%c103] : memref<128xf32, #tpu.memory_space<smem>>
    %384 = vector.broadcast %383 : f32 to vector<16x128xf32>
    %385 = arith.addf %382, %384 : vector<16x128xf32>
    %cst_20 = arith.constant 0.000000e+00 : f32
    %386 = vector.broadcast %cst_20 : f32 to vector<16x128xf32>
    %387 = arith.maximumf %385, %386 : vector<16x128xf32>
    %c88 = arith.constant 88 : index
    %388 = memref.load %arg1[%c88] : memref<128xf32, #tpu.memory_space<smem>>
    %389 = vector.broadcast %388 : f32 to vector<16x128xf32>
    %390 = arith.mulf %15, %389 : vector<16x128xf32>
    %c89 = arith.constant 89 : index
    %391 = memref.load %arg1[%c89] : memref<128xf32, #tpu.memory_space<smem>>
    %392 = vector.broadcast %391 : f32 to vector<16x128xf32>
    %393 = arith.mulf %27, %392 : vector<16x128xf32>
    %394 = arith.addf %390, %393 : vector<16x128xf32>
    %c90 = arith.constant 90 : index
    %395 = memref.load %arg1[%c90] : memref<128xf32, #tpu.memory_space<smem>>
    %396 = vector.broadcast %395 : f32 to vector<16x128xf32>
    %397 = arith.mulf %39, %396 : vector<16x128xf32>
    %398 = arith.addf %394, %397 : vector<16x128xf32>
    %c91 = arith.constant 91 : index
    %399 = memref.load %arg1[%c91] : memref<128xf32, #tpu.memory_space<smem>>
    %400 = vector.broadcast %399 : f32 to vector<16x128xf32>
    %401 = arith.mulf %51, %400 : vector<16x128xf32>
    %402 = arith.addf %398, %401 : vector<16x128xf32>
    %c92 = arith.constant 92 : index
    %403 = memref.load %arg1[%c92] : memref<128xf32, #tpu.memory_space<smem>>
    %404 = vector.broadcast %403 : f32 to vector<16x128xf32>
    %405 = arith.mulf %63, %404 : vector<16x128xf32>
    %406 = arith.addf %402, %405 : vector<16x128xf32>
    %c93 = arith.constant 93 : index
    %407 = memref.load %arg1[%c93] : memref<128xf32, #tpu.memory_space<smem>>
    %408 = vector.broadcast %407 : f32 to vector<16x128xf32>
    %409 = arith.mulf %75, %408 : vector<16x128xf32>
    %410 = arith.addf %406, %409 : vector<16x128xf32>
    %c94 = arith.constant 94 : index
    %411 = memref.load %arg1[%c94] : memref<128xf32, #tpu.memory_space<smem>>
    %412 = vector.broadcast %411 : f32 to vector<16x128xf32>
    %413 = arith.mulf %87, %412 : vector<16x128xf32>
    %414 = arith.addf %410, %413 : vector<16x128xf32>
    %c95 = arith.constant 95 : index
    %415 = memref.load %arg1[%c95] : memref<128xf32, #tpu.memory_space<smem>>
    %416 = vector.broadcast %415 : f32 to vector<16x128xf32>
    %417 = arith.mulf %99, %416 : vector<16x128xf32>
    %418 = arith.addf %414, %417 : vector<16x128xf32>
    %c104 = arith.constant 104 : index
    %419 = memref.load %arg1[%c104] : memref<128xf32, #tpu.memory_space<smem>>
    %420 = vector.broadcast %419 : f32 to vector<16x128xf32>
    %421 = arith.addf %418, %420 : vector<16x128xf32>
    %cst_21 = arith.constant 0.000000e+00 : f32
    %422 = vector.broadcast %cst_21 : f32 to vector<16x128xf32>
    %423 = arith.maximumf %421, %422 : vector<16x128xf32>
    %c105 = arith.constant 105 : index
    %424 = memref.load %arg1[%c105] : memref<128xf32, #tpu.memory_space<smem>>
    %425 = vector.broadcast %424 : f32 to vector<16x128xf32>
    %426 = arith.mulf %135, %425 : vector<16x128xf32>
    %c106 = arith.constant 106 : index
    %427 = memref.load %arg1[%c106] : memref<128xf32, #tpu.memory_space<smem>>
    %428 = vector.broadcast %427 : f32 to vector<16x128xf32>
    %429 = arith.mulf %171, %428 : vector<16x128xf32>
    %430 = arith.addf %426, %429 : vector<16x128xf32>
    %c107 = arith.constant 107 : index
    %431 = memref.load %arg1[%c107] : memref<128xf32, #tpu.memory_space<smem>>
    %432 = vector.broadcast %431 : f32 to vector<16x128xf32>
    %433 = arith.mulf %207, %432 : vector<16x128xf32>
    %434 = arith.addf %430, %433 : vector<16x128xf32>
    %c108 = arith.constant 108 : index
    %435 = memref.load %arg1[%c108] : memref<128xf32, #tpu.memory_space<smem>>
    %436 = vector.broadcast %435 : f32 to vector<16x128xf32>
    %437 = arith.mulf %243, %436 : vector<16x128xf32>
    %438 = arith.addf %434, %437 : vector<16x128xf32>
    %c109 = arith.constant 109 : index
    %439 = memref.load %arg1[%c109] : memref<128xf32, #tpu.memory_space<smem>>
    %440 = vector.broadcast %439 : f32 to vector<16x128xf32>
    %441 = arith.mulf %279, %440 : vector<16x128xf32>
    %442 = arith.addf %438, %441 : vector<16x128xf32>
    %c110 = arith.constant 110 : index
    %443 = memref.load %arg1[%c110] : memref<128xf32, #tpu.memory_space<smem>>
    %444 = vector.broadcast %443 : f32 to vector<16x128xf32>
    %445 = arith.mulf %315, %444 : vector<16x128xf32>
    %446 = arith.addf %442, %445 : vector<16x128xf32>
    %c111 = arith.constant 111 : index
    %447 = memref.load %arg1[%c111] : memref<128xf32, #tpu.memory_space<smem>>
    %448 = vector.broadcast %447 : f32 to vector<16x128xf32>
    %449 = arith.mulf %351, %448 : vector<16x128xf32>
    %450 = arith.addf %446, %449 : vector<16x128xf32>
    %c112 = arith.constant 112 : index
    %451 = memref.load %arg1[%c112] : memref<128xf32, #tpu.memory_space<smem>>
    %452 = vector.broadcast %451 : f32 to vector<16x128xf32>
    %453 = arith.mulf %387, %452 : vector<16x128xf32>
    %454 = arith.addf %450, %453 : vector<16x128xf32>
    %c113 = arith.constant 113 : index
    %455 = memref.load %arg1[%c113] : memref<128xf32, #tpu.memory_space<smem>>
    %456 = vector.broadcast %455 : f32 to vector<16x128xf32>
    %457 = arith.mulf %423, %456 : vector<16x128xf32>
    %458 = arith.addf %454, %457 : vector<16x128xf32>
    %c123 = arith.constant 123 : index
    %459 = memref.load %arg1[%c123] : memref<128xf32, #tpu.memory_space<smem>>
    %460 = vector.broadcast %459 : f32 to vector<16x128xf32>
    %461 = arith.addf %458, %460 : vector<16x128xf32>
    %c114 = arith.constant 114 : index
    %462 = memref.load %arg1[%c114] : memref<128xf32, #tpu.memory_space<smem>>
    %463 = vector.broadcast %462 : f32 to vector<16x128xf32>
    %464 = arith.mulf %135, %463 : vector<16x128xf32>
    %c115 = arith.constant 115 : index
    %465 = memref.load %arg1[%c115] : memref<128xf32, #tpu.memory_space<smem>>
    %466 = vector.broadcast %465 : f32 to vector<16x128xf32>
    %467 = arith.mulf %171, %466 : vector<16x128xf32>
    %468 = arith.addf %464, %467 : vector<16x128xf32>
    %c116 = arith.constant 116 : index
    %469 = memref.load %arg1[%c116] : memref<128xf32, #tpu.memory_space<smem>>
    %470 = vector.broadcast %469 : f32 to vector<16x128xf32>
    %471 = arith.mulf %207, %470 : vector<16x128xf32>
    %472 = arith.addf %468, %471 : vector<16x128xf32>
    %c117 = arith.constant 117 : index
    %473 = memref.load %arg1[%c117] : memref<128xf32, #tpu.memory_space<smem>>
    %474 = vector.broadcast %473 : f32 to vector<16x128xf32>
    %475 = arith.mulf %243, %474 : vector<16x128xf32>
    %476 = arith.addf %472, %475 : vector<16x128xf32>
    %c118 = arith.constant 118 : index
    %477 = memref.load %arg1[%c118] : memref<128xf32, #tpu.memory_space<smem>>
    %478 = vector.broadcast %477 : f32 to vector<16x128xf32>
    %479 = arith.mulf %279, %478 : vector<16x128xf32>
    %480 = arith.addf %476, %479 : vector<16x128xf32>
    %c119 = arith.constant 119 : index
    %481 = memref.load %arg1[%c119] : memref<128xf32, #tpu.memory_space<smem>>
    %482 = vector.broadcast %481 : f32 to vector<16x128xf32>
    %483 = arith.mulf %315, %482 : vector<16x128xf32>
    %484 = arith.addf %480, %483 : vector<16x128xf32>
    %c120 = arith.constant 120 : index
    %485 = memref.load %arg1[%c120] : memref<128xf32, #tpu.memory_space<smem>>
    %486 = vector.broadcast %485 : f32 to vector<16x128xf32>
    %487 = arith.mulf %351, %486 : vector<16x128xf32>
    %488 = arith.addf %484, %487 : vector<16x128xf32>
    %c121 = arith.constant 121 : index
    %489 = memref.load %arg1[%c121] : memref<128xf32, #tpu.memory_space<smem>>
    %490 = vector.broadcast %489 : f32 to vector<16x128xf32>
    %491 = arith.mulf %387, %490 : vector<16x128xf32>
    %492 = arith.addf %488, %491 : vector<16x128xf32>
    %c122 = arith.constant 122 : index
    %493 = memref.load %arg1[%c122] : memref<128xf32, #tpu.memory_space<smem>>
    %494 = vector.broadcast %493 : f32 to vector<16x128xf32>
    %495 = arith.mulf %423, %494 : vector<16x128xf32>
    %496 = arith.addf %492, %495 : vector<16x128xf32>
    %c124 = arith.constant 124 : index
    %497 = memref.load %arg1[%c124] : memref<128xf32, #tpu.memory_space<smem>>
    %498 = vector.broadcast %497 : f32 to vector<16x128xf32>
    %499 = arith.addf %496, %498 : vector<16x128xf32>
    %c0_22 = arith.constant 0 : index
    %c0_23 = arith.constant 0 : index
    %c0_24 = arith.constant 0 : index
    %500 = vector.load %arg3[%c0_22, %c0_23, %c0_24] : memref<2x16x128xf32, #tpu.memory_space<vmem>>, vector<1x16x128xf32>
    %501 = vector.shape_cast %500 : vector<1x16x128xf32> to vector<16x128xf32>
    %502 = vector.shape_cast %461 : vector<16x128xf32> to vector<1x16x128xf32>
    tpu.vector_store %arg3[%c0_22, %c0_23, %c0_24], %502 {strides = array<i32>} : memref<2x16x128xf32, #tpu.memory_space<vmem>>, vector<1x16x128xf32>,
    %c1_25 = arith.constant 1 : index
    %c0_26 = arith.constant 0 : index
    %c0_27 = arith.constant 0 : index
    %503 = vector.load %arg3[%c1_25, %c0_26, %c0_27] : memref<2x16x128xf32, #tpu.memory_space<vmem>>, vector<1x16x128xf32>
    %504 = vector.shape_cast %503 : vector<1x16x128xf32> to vector<16x128xf32>
    %505 = vector.shape_cast %499 : vector<16x128xf32> to vector<1x16x128xf32>
    tpu.vector_store %arg3[%c1_25, %c0_26, %c0_27], %505 {strides = array<i32>} : memref<2x16x128xf32, #tpu.memory_space<vmem>>, vector<1x16x128xf32>,
    return
  }
  func.func @transform_0(%arg0: i32) -> i32 {
    %c0_i32 = arith.constant 0 : i32
    %c0_i32_0 = arith.constant 0 : i32
    return %c0_i32 : i32
  }
  func.func @transform_1(%arg0: i32) -> (i32, i32, i32) {
    %c0_i32 = arith.constant 0 : i32
    %c0_i32_0 = arith.constant 0 : i32
    %c0_i32_1 = arith.constant 0 : i32
    return %c0_i32, %arg0, %c0_i32_0 : i32, i32, i32
  }
  func.func @transform_2(%arg0: i32) -> (i32, i32, i32) {
    %c0_i32 = arith.constant 0 : i32
    %c0_i32_0 = arith.constant 0 : i32
    %c0_i32_1 = arith.constant 0 : i32
    return %c0_i32, %arg0, %c0_i32_0 : i32, i32, i32
  }
}

</mosaic_0001>

<bundles_post_ra>
// kernel: mlp_forward_fm.1
= control target key start
LH: loop header
LB: loop body
LE: loop exit
PB: predicated region body
PF: predicated region fallthrough
CT: control target
= control target key end

     0   :  { %7 = vsyncpa [#allocation3], 0  ;;  %s1284_s9 = smov 0   ;;  %s1286_s10 = smov 0   ;;  %s2071_s0 = inlined_call_operand.vmem [shape: f32[128], index: 0, kind: input, shape index: {}]   ;;  %s2072_s1 = inlined_call_operand.vmem [shape: f32[2,32,128], index: 1, kind: input, shape index: {}]   ;;  %s2073_s2 = inlined_call_operand.vmem [shape: f32[2,32,128], index: 2, kind: output, shape index: {}]  }
   0x1   :  { %s1288_s11 = smov 0  }
   0x2 LB: > { %s1300_s12 = sadd.s32 4294967295, %s1266_s11   ;;  %s1303_s13 = sadd.s32 1, %s1266_s11   ;;  %s1266_s11 = sphi %s1288_s11, %s2083_s11   ;;  %s1262_s10 = sphi %s1286_s10, %s2082_s10   ;;  %s1258_s9 = sphi %s1284_s9, %s2081_s9  }
   0x3   : > { %s38_s14 = ssub.s32 %s1266_s11, %s1303_s13  ;;  %s41_s15 = sadd.s32 1, %s1262_s10 }
   0x4   : > { %p39_p0 = scmp.eq.s32.totalorder %s38_s14, 0  ;;  %p48_p1 = scmp.ne.s32.totalorder %s1262_s10, %s1258_s9 }
   0x5   : > { %p49_p2 = scmp.eq.s32.totalorder %s1266_s11, 0  ;;  %p78_p3 = scmp.eq.s32.totalorder %s1300_s12, 1 }
   0x6   : > { %s1313_s16 = scalar_select %p39_p0, %s1262_s10, %s41_s15  }
   0x7   : > { %p1315_p4 = por %p49_p2, %p48_p1  ;;  %p1319_p5 = por %p78_p3, %p48_p1 }
   0x8   : > { %p1045_p6 = scmp.ge.s32.totalorder %s1266_s11, 1  ;;  %p91_p7 = scmp.lt.s32.totalorder %s1266_s11, 3 }
   0x9   : > { %p1198_p8 = scmp.eq.s32.totalorder %s1300_s12, 0  ;;  %s103_s22 = sshll.u32 %s2071_s0, 4  ;;  %s104_s22 = int_to_ptr.vmem [resolvable:$true] %s103_s22 }
   0xa   : > { %p1326_p9 = pnand %p1045_p6, %p91_p7  ;;  %s1268_s23 = smov [#allocation2]  }
   0xb   : > { %p1047_p12 = scmp.ge.s32.totalorder %s1266_s11, 2 }
   0xc   : > { %p1194_p10 = pneg %p1326_p9 }
   0xd   : > { %110 = sbr.rel (%p1047_p12) target bundleno = 26 (0x1a), region = 20 }
   0xe   : > { %p1195_p11 = pnand %p1198_p8, %p1194_p10 }
  0x10   : > { %1197 = dma.vmem_to_smem (!%p1195_p11), %s104_s22, 16, %s1268_s23, [#allocation3]  }
  0x12   : > { %113 = sbr.rel (!%p1315_p4) target bundleno = 26 (0x1a), region = 24  ;;  %s115_s24 = sand.u32 (%p1315_p4), 1, %s1262_s10  }
  0x13   : > { %s1188_s25 = sshll.u32 (%p1315_p4), %s1266_s11, 4  ;;  %s1048_s26 = sshll.u32 (%p1315_p4), %s115_s24, 5 }
  0x14   : > { %s120_s29 = scalar_lea.vmem (%p1315_p4), %s2072_s1, %s1188_s25  ;;  %s117_s30 = scalar_lea.vmem (%p1315_p4), [#allocation4], %s1048_s26 }
  0x15   : > { %v155_v0 = vld [vmem:[%s120_s29] sm:$0xff] (%p1315_p4)  ;;  %v157_v1 = vld [vmem:[%s120_s29 + $0x8] sm:$0xff] (%p1315_p4) }
  0x16   : > { %v159_v2 = vld [vmem:[%s120_s29 + $0x20] sm:$0xff] (%p1315_p4)  ;;  %156 = vst [vmem:[%s117_s30] sm:$0xff] (%p1315_p4), %v155_v0  ;;  %v161_v3 = vld [vmem:[%s120_s29 + $0x28] sm:$0xff] (%p1315_p4) }
  0x17   : > { %158 = vst [vmem:[%s117_s30 + $0x8] sm:$0xff] %v157_v1 }
  0x18   : > { %160 = vst [vmem:[%s117_s30 + $0x10] sm:$0xff] %v159_v2 }
  0x19   : > { %162 = vst [vmem:[%s117_s30 + $0x18] sm:$0xff] %v161_v3 }
  0x1a PF: > { %171 = sbr.rel (%p1326_p9) target bundleno = 207 (0xcf), region = 62 }
  0x1f   : > { %1253 = dma.done.wait (%p1198_p8), [#allocation3], 16  }
  0x20   : > { %1255 = vsyncadd (%p1198_p8), [#allocation3], 4294967280  ;;  %s179_s3 = sand.u32 1, %s1258_s9  }
  0x21   : > { %s1352_s4 = sshll.u32 %s179_s3, 5 }
  0x22   : > { %s181_s5 = scalar_lea.vmem [#allocation4], %s1352_s4 }
  0x23   : > { %185 = sfence }
  0x24   : > { %s207_s6 = sld [smem:[#allocation2]]  ;;  %v1357_v4 = vld [vmem:[%s181_s5] sm:$0xff]  ;;  %v1359_v5 = vld [vmem:[%s181_s5 + $0x8] sm:$0xff]  ;;  %v1361_v6 = vld [vmem:[%s181_s5 + $0x10] sm:$0xff] }
  0x25   : > { %s1057_s7 = sld [smem:[#allocation2 + $0x1]]  ;;  %v1363_v7 = vld [vmem:[%s181_s5 + $0x18] sm:$0xff] }
  0x26   : > { %s1355_s8 = sld [smem:[#allocation2 + $0x10]] }
  0x27   : > { %s1059_s11 = sld [smem:[#allocation2 + $0x2]] }
  0x28   : > { %s1060_s14 = sld [smem:[#allocation2 + $0x3]] }
  0x29   : > { %s1365_s9 = sld [smem:[#allocation2 + $0x11]] }
  0x2a   : > { %v208_v8 = vstv %s207_s6  ;;  %s1367_s15 = sld [smem:[#allocation2 + $0x4]] }
  0x2b   : > { %v209_v9 = vmul.f32 %v208_v8, %v1357_v4  ;;  %v210_v10 = vmul.f32 %v208_v8, %v1359_v5  ;;  %v212_v11 = vstv %s1057_s7  ;;  %s1063_s17 = sld [smem:[#allocation2 + $0x5]] }
  0x2c   : > { %v213_v12 = vmul.f32 %v1361_v6, %v212_v11  ;;  %v214_v13 = vmul.f32 %v1363_v7, %v212_v11  ;;  %s1373_s19 = sld [smem:[#allocation2 + $0x12]]  ;;  %v218_v14 = vstv %s1355_s8 }
  0x2d   : > { %v224_v15 = vstv %s1059_s11  ;;  %s1376_s20 = sld [smem:[#allocation2 + $0x6]] }
  0x2e   : > { %v215_v16 = vadd.f32 %v213_v12, %v209_v9  ;;  %v216_v17 = vadd.f32 %v214_v13, %v210_v10  ;;  %v225_v18 = vmul.f32 %v224_v15, %v1357_v4  ;;  %v226_v19 = vmul.f32 %v224_v15, %v1359_v5  ;;  %s1380_s21 = sld [smem:[#allocation2 + $0x7]] }
  0x2f   : > { %v228_v20 = vstv %s1060_s14  ;;  %s1382_s22 = sld [smem:[#allocation2 + $0x13]]  ;;  %v234_v24 = vstv %s1365_s9 }
  0x30   : > { %v219_v21 = vadd.f32 %v218_v14, %v215_v16  ;;  %v229_v22 = vmul.f32 %v1361_v6, %v228_v20  ;;  %v230_v23 = vmul.f32 %v1363_v7, %v228_v20  ;;  %s1386_s23 = sld [smem:[#allocation2 + $0x8]]  ;;  %v240_v25 = vstv %s1367_s15 }
  0x31   : > { %v244_v26 = vstv %s1063_s17  ;;  %s1390_s24 = sld [smem:[#allocation2 + $0x9]]  ;;  %v220_v27 = vadd.f32 %v218_v14, %v216_v17  ;;  %v241_v31 = vmul.f32 %v240_v25, %v1357_v4  ;;  %v242_v32 = vmul.f32 %v240_v25, %v1359_v5 }
  0x32   : > { %v1392_v28 = vmax.f32 %v219_v21, 0.0  ;;  %v231_v29 = vadd.f32 %v229_v22, %v225_v18  ;;  %v232_v30 = vadd.f32 %v230_v23, %v226_v19  ;;  %s1394_s25 = sld [smem:[#allocation2 + $0x14]]  ;;  %v245_v33 = vmul.f32 %v1361_v6, %v244_v26 }
  0x33   : > { %v246_v34 = vmul.f32 %v1363_v7, %v244_v26  ;;  %s1400_s26 = sld [smem:[#allocation2 + $0xa]]  ;;  %v250_v37 = vstv %s1373_s19  ;;  %v256_v38 = vstv %s1376_s20  ;;  %v1410_v43 = vmax.f32 %v220_v27, 0.0 }
  0x34   : > { %v235_v35 = vadd.f32 %v234_v24, %v231_v29  ;;  %v236_v36 = vadd.f32 %v234_v24, %v232_v30  ;;  %s1404_s27 = sld [smem:[#allocation2 + $0xb]]  ;;  %v247_v39 = vadd.f32 %v245_v33, %v241_v31  ;;  %v257_v41 = vmul.f32 %v256_v38, %v1357_v4 }
  0x35   : > { %v248_v40 = vadd.f32 %v246_v34, %v242_v32  ;;  %v258_v42 = vmul.f32 %v256_v38, %v1359_v5  ;;  %s1408_s28 = sld [smem:[#allocation2 + $0x15]]  ;;  %v260_v46 = vstv %s1380_s21  ;;  %v266_v51 = vstv %s1382_s22 }
  0x36   : > { %v1412_v44 = vmax.f32 %v235_v35, 0.0  ;;  %v1414_v45 = vmax.f32 %v236_v36, 0.0  ;;  %s1417_s29 = sld [smem:[#allocation2 + $0xc]]  ;;  %v251_v47 = vadd.f32 %v250_v37, %v247_v39  ;;  %v261_v49 = vmul.f32 %v1361_v6, %v260_v46 }
  0x37   : > { %v252_v48 = vadd.f32 %v250_v37, %v248_v40  ;;  %v262_v50 = vmul.f32 %v1363_v7, %v260_v46  ;;  %s1421_s30 = sld [smem:[#allocation2 + $0xd]]  ;;  %v272_v52 = vstv %s1386_s23  ;;  %v276_v53 = vstv %s1390_s24 }
  0x38   : > { %v282_v54 = vstv %s1394_s25  ;;  %s1427_s3 = sld [smem:[#allocation2 + $0x16]]  ;;  %v1429_v55 = vmax.f32 %v251_v47, 0.0  ;;  %v263_v57 = vadd.f32 %v261_v49, %v257_v41  ;;  %v273_v59 = vmul.f32 %v272_v52, %v1357_v4 }
  0x39   : > { %v1431_v56 = vmax.f32 %v252_v48, 0.0  ;;  %v264_v58 = vadd.f32 %v262_v50, %v258_v42  ;;  %s1433_s5 = sld [smem:[#allocation2 + $0xe]]  ;;  %v274_v60 = vmul.f32 %v272_v52, %v1359_v5  ;;  %v277_v61 = vmul.f32 %v1361_v6, %v276_v53 }
  0x3a   : > { %v278_v62 = vmul.f32 %v1363_v7, %v276_v53  ;;  %s1439_s6 = sld [smem:[#allocation2 + $0xf]]  ;;  %v267_v63 = vadd.f32 %v266_v51, %v263_v57  ;;  %v288_v1 = vstv %s1400_s26  ;;  %v292_v2 = vstv %s1404_s27 }
  0x3b   : > { %v268_v0 = vadd.f32 %v266_v51, %v264_v58  ;;  %s1443_s7 = sld [smem:[#allocation2 + $0x17]]  ;;  %v279_v3 = vadd.f32 %v277_v61, %v273_v59  ;;  %v289_v9 = vmul.f32 %v288_v1, %v1357_v4  ;;  %v290_v10 = vmul.f32 %v288_v1, %v1359_v5 }
  0x3c   : > { %v280_v8 = vadd.f32 %v278_v62, %v274_v60  ;;  %s1447_s8 = sld [smem:[#allocation2 + $0x18]]  ;;  %v1449_v11 = vmax.f32 %v267_v63, 0.0  ;;  %v293_v13 = vmul.f32 %v1361_v6, %v292_v2  ;;  %v294_v14 = vmul.f32 %v1363_v7, %v292_v2 }
  0x3d   : > { %v1451_v12 = vmax.f32 %v268_v0, 0.0  ;;  %s1455_s11 = sld [smem:[#allocation2 + $0x19]]  ;;  %v283_v15 = vadd.f32 %v282_v54, %v279_v3  ;;  %v298_v17 = vstv %s1408_s28  ;;  %v304_v18 = vstv %s1417_s29 }
  0x3e   : > { %v284_v16 = vadd.f32 %v282_v54, %v280_v8  ;;  %s1459_s14 = sld [smem:[#allocation2 + $0x1a]]  ;;  %v295_v19 = vadd.f32 %v293_v13, %v289_v9  ;;  %v296_v20 = vadd.f32 %v294_v14, %v290_v10  ;;  %v305_v21 = vmul.f32 %v304_v18, %v1357_v4 }
  0x3f   : > { %v306_v22 = vmul.f32 %v304_v18, %v1359_v5  ;;  %s1463_s9 = sld [smem:[#allocation2 + $0x1b]]  ;;  %v1465_v23 = vmax.f32 %v283_v15, 0.0  ;;  %v308_v25 = vstv %s1421_s30  ;;  %v314_v26 = vstv %s1427_s3 }
  0x40   : > { %v1467_v24 = vmax.f32 %v284_v16, 0.0  ;;  %s1471_s15 = sld [smem:[#allocation2 + $0x1c]]  ;;  %v299_v27 = vadd.f32 %v298_v17, %v295_v19  ;;  %v300_v29 = vadd.f32 %v298_v17, %v296_v20  ;;  %v309_v30 = vmul.f32 %v1361_v6, %v308_v25 }
  0x41   : > { %v310_v31 = vmul.f32 %v1363_v7, %v308_v25  ;;  %s1475_s17 = sld [smem:[#allocation2 + $0x1d]]  ;;  %v320_v32 = vstv %s1433_s5  ;;  %v324_v33 = vstv %s1439_s6  ;;  %v330_v34 = vstv %s1443_s7 }
  0x42   : > { %v336_v35 = vstv %s1447_s8  ;;  %s1481_s19 = sld [smem:[#allocation2 + $0x1e]]  ;;  %v1483_v36 = vmax.f32 %v299_v27, 0.0  ;;  %v1485_v37 = vmax.f32 %v300_v29, 0.0  ;;  %v311_v38 = vadd.f32 %v309_v30, %v305_v21 }
  0x43   : > { %v312_v39 = vadd.f32 %v310_v31, %v306_v22  ;;  %s1487_s20 = sld [smem:[#allocation2 + $0x1f]]  ;;  %v321_v40 = vmul.f32 %v320_v32, %v1357_v4  ;;  %v322_v41 = vmul.f32 %v320_v32, %v1359_v5  ;;  %v325_v42 = vmul.f32 %v1361_v6, %v324_v33 }
  0x44   : > { %v326_v46 = vmul.f32 %v1363_v7, %v324_v33  ;;  %s1493_s21 = sld [smem:[#allocation2 + $0x60]]  ;;  %v315_v47 = vadd.f32 %v314_v26, %v311_v38  ;;  %v337_v49 = vmul.f32 %v336_v35, %v1392_v28  ;;  %v338_v50 = vmul.f32 %v336_v35, %v1410_v43 }
  0x45   : > { %v316_v48 = vadd.f32 %v314_v26, %v312_v39  ;;  %v327_v51 = vadd.f32 %v325_v42, %v321_v40  ;;  %v340_v53 = vstv %s1455_s11  ;;  %v346_v4 = vstv %s1459_s14  ;;  %s1499_s22 = sld [smem:[#allocation2 + $0x20]] }
  0x46   : > { %v328_v52 = vadd.f32 %v326_v46, %v322_v41  ;;  %v1501_v5 = vmax.f32 %v315_v47, 0.0  ;;  %v341_v7 = vmul.f32 %v340_v53, %v1412_v44  ;;  %v342_v54 = vmul.f32 %v340_v53, %v1414_v45  ;;  %s1507_s23 = sld [smem:[#allocation2 + $0x21]] }
  0x47   : > { %v1503_v6 = vmax.f32 %v316_v48, 0.0  ;;  %v331_v57 = vadd.f32 %v330_v34, %v327_v51  ;;  %v347_v59 = vmul.f32 %v346_v4, %v1429_v55  ;;  %v348_v60 = vmul.f32 %v346_v4, %v1431_v56  ;;  %s1511_s24 = sld [smem:[#allocation2 + $0x22]] }
  0x48   : > { %v332_v58 = vadd.f32 %v330_v34, %v328_v52  ;;  %v343_v61 = vadd.f32 %v341_v7, %v337_v49  ;;  %v344_v62 = vadd.f32 %v342_v54, %v338_v50  ;;  %v352_v63 = vstv %s1463_s9  ;;  %s1515_s25 = sld [smem:[#allocation2 + $0x23]] }
  0x49   : > { %v358_v0 = vstv %s1471_s15  ;;  %v1517_v1 = vmax.f32 %v331_v57, 0.0  ;;  %v353_v3 = vmul.f32 %v352_v63, %v1449_v11  ;;  %v354_v8 = vmul.f32 %v352_v63, %v1451_v12  ;;  %s1525_s26 = sld [smem:[#allocation2 + $0x24]] }
  0x4a   : > { %v1519_v2 = vmax.f32 %v332_v58, 0.0  ;;  %v349_v9 = vadd.f32 %v347_v59, %v343_v61  ;;  %v350_v10 = vadd.f32 %v348_v60, %v344_v62  ;;  %v359_v13 = vmul.f32 %v358_v0, %v1465_v23  ;;  %s1531_s27 = sld [smem:[#allocation2 + $0x25]] }
  0x4b   : > { %v360_v14 = vmul.f32 %v358_v0, %v1467_v24  ;;  %v364_v15 = vstv %s1475_s17  ;;  %v370_v16 = vstv %s1481_s19  ;;  %v376_v17 = vstv %s1487_s20  ;;  %s1539_s28 = sld [smem:[#allocation2 + $0x26]] }
  0x4c   : > { %v382_v18 = vstv %s1493_s21  ;;  %v355_v19 = vadd.f32 %v353_v3, %v349_v9  ;;  %v356_v20 = vadd.f32 %v354_v8, %v350_v10  ;;  %v365_v21 = vmul.f32 %v364_v15, %v1483_v36  ;;  %s1543_s29 = sld [smem:[#allocation2 + $0x27]] }
  0x4d   : > { %v366_v22 = vmul.f32 %v364_v15, %v1485_v37  ;;  %v371_v25 = vmul.f32 %v370_v16, %v1501_v5  ;;  %v372_v26 = vmul.f32 %v370_v16, %v1503_v6  ;;  %v377_v27 = vmul.f32 %v376_v17, %v1517_v1  ;;  %s1549_s30 = sld [smem:[#allocation2 + $0x61]] }
  0x4e   : > { %v378_v29 = vmul.f32 %v376_v17, %v1519_v2  ;;  %v361_v30 = vadd.f32 %v359_v13, %v355_v19  ;;  %v362_v31 = vadd.f32 %v360_v14, %v356_v20  ;;  %v388_v32 = vstv %s1499_s22  ;;  %s1553_s3 = sld [smem:[#allocation2 + $0x28]] }
  0x4f   : > { %v392_v33 = vstv %s1507_s23  ;;  %v389_v34 = vmul.f32 %v388_v32, %v1392_v28  ;;  %v390_v35 = vmul.f32 %v388_v32, %v1410_v43  ;;  %v398_v42 = vstv %s1511_s24  ;;  %s1557_s5 = sld [smem:[#allocation2 + $0x29]] }
  0x50   : > { %v393_v38 = vmul.f32 %v392_v33, %v1412_v44  ;;  %v394_v39 = vmul.f32 %v392_v33, %v1414_v45  ;;  %v367_v40 = vadd.f32 %v365_v21, %v361_v30  ;;  %v368_v41 = vadd.f32 %v366_v22, %v362_v31  ;;  %s1561_s6 = sld [smem:[#allocation2 + $0x2a]] }
  0x51   : > { %v404_v46 = vstv %s1515_s25  ;;  %v399_v49 = vmul.f32 %v398_v42, %v1429_v55  ;;  %v400_v50 = vmul.f32 %v398_v42, %v1431_v56  ;;  %v410_v57 = vstv %s1525_s26  ;;  %s1565_s7 = sld [smem:[#allocation2 + $0x2b]] }
  0x52   : > { %v395_v47 = vadd.f32 %v393_v38, %v389_v34  ;;  %v396_v48 = vadd.f32 %v394_v39, %v390_v35  ;;  %v373_v51 = vadd.f32 %v371_v25, %v367_v40  ;;  %v374_v52 = vadd.f32 %v372_v26, %v368_v41  ;;  %s1569_s8 = sld [smem:[#allocation2 + $0x2c]] }
  0x53   : > { %v405_v53 = vmul.f32 %v404_v46, %v1449_v11  ;;  %v406_v4 = vmul.f32 %v404_v46, %v1451_v12  ;;  %v416_v58 = vstv %s1531_s27  ;;  %v411_v61 = vmul.f32 %v410_v57, %v1465_v23  ;;  %s1573_s11 = sld [smem:[#allocation2 + $0x2d]] }
  0x54   : > { %v401_v7 = vadd.f32 %v399_v49, %v395_v47  ;;  %v402_v54 = vadd.f32 %v400_v50, %v396_v48  ;;  %v379_v59 = vadd.f32 %v377_v27, %v373_v51  ;;  %v380_v60 = vadd.f32 %v378_v29, %v374_v52  ;;  %s1581_s14 = sld [smem:[#allocation2 + $0x2e]] }
  0x55   : > { %v412_v62 = vmul.f32 %v410_v57, %v1467_v24  ;;  %v417_v3 = vmul.f32 %v416_v58, %v1483_v36  ;;  %v418_v8 = vmul.f32 %v416_v58, %v1485_v37  ;;  %v422_v13 = vstv %s1539_s28  ;;  %s1585_s9 = sld [smem:[#allocation2 + $0x2f]] }
  0x56   : > { %v407_v63 = vadd.f32 %v405_v53, %v401_v7  ;;  %v408_v0 = vadd.f32 %v406_v4, %v402_v54  ;;  %v1575_v9 = vadd.f32 %v382_v18, %v379_v59  ;;  %v1577_v10 = vadd.f32 %v382_v18, %v380_v60  ;;  %s1591_s15 = sld [smem:[#allocation2 + $0x62]] }
  0x57   : > { %v428_v14 = vstv %s1543_s29  ;;  %v423_v17 = vmul.f32 %v422_v13, %v1501_v5  ;;  %v424_v19 = vmul.f32 %v422_v13, %v1503_v6  ;;  %v434_v27 = vstv %s1549_s30  ;;  %s1595_s17 = sld [smem:[#allocation2 + $0x30]] }
  0x58   : > { %v413_v15 = vadd.f32 %v411_v61, %v407_v63  ;;  %v414_v16 = vadd.f32 %v412_v62, %v408_v0  ;;  %v385_v20 = vmax.f32 %v1575_v9, 0.0  ;;  %v386_v18 = vmax.f32 %v1577_v10, 0.0  ;;  %s1601_s19 = sld [smem:[#allocation2 + $0x31]] }
  0x59   : > { %v429_v21 = vmul.f32 %v428_v14, %v1517_v1  ;;  %v430_v22 = vmul.f32 %v428_v14, %v1519_v2  ;;  %v440_v29 = vstv %s1553_s3  ;;  %v444_v32 = vstv %s1557_s5  ;;  %s1605_s20 = sld [smem:[#allocation2 + $0x32]] }
  0x5a   : > { %v419_v25 = vadd.f32 %v417_v3, %v413_v15  ;;  %v420_v26 = vadd.f32 %v418_v8, %v414_v16  ;;  %v441_v30 = vmul.f32 %v440_v29, %v1392_v28  ;;  %v442_v31 = vmul.f32 %v440_v29, %v1410_v43  ;;  %s1611_s21 = sld [smem:[#allocation2 + $0x33]] }
  0x5b   : > { %v450_v33 = vstv %s1561_s6  ;;  %v445_v38 = vmul.f32 %v444_v32, %v1412_v44  ;;  %v446_v39 = vmul.f32 %v444_v32, %v1414_v45  ;;  %v456_v42 = vstv %s1565_s7  ;;  %s1621_s22 = sld [smem:[#allocation2 + $0x34]] }
  0x5c   : > { %v425_v34 = vadd.f32 %v423_v17, %v419_v25  ;;  %v426_v35 = vadd.f32 %v424_v19, %v420_v26  ;;  %v451_v40 = vmul.f32 %v450_v33, %v1429_v55  ;;  %v452_v41 = vmul.f32 %v450_v33, %v1431_v56  ;;  %s1627_s23 = sld [smem:[#allocation2 + $0x35]] }
  0x5d   : > { %v462_v46 = vstv %s1569_s8  ;;  %v447_v49 = vadd.f32 %v445_v38, %v441_v30  ;;  %v448_v50 = vadd.f32 %v446_v39, %v442_v31  ;;  %v457_v51 = vmul.f32 %v456_v42, %v1449_v11  ;;  %s1635_s24 = sld [smem:[#allocation2 + $0x36]] }
  0x5e   : > { %v431_v47 = vadd.f32 %v429_v21, %v425_v34  ;;  %v432_v48 = vadd.f32 %v430_v22, %v426_v35  ;;  %v458_v52 = vmul.f32 %v456_v42, %v1451_v12  ;;  %v463_v53 = vmul.f32 %v462_v46, %v1465_v23  ;;  %s1639_s25 = sld [smem:[#allocation2 + $0x37]] }
  0x5f   : > { %v464_v4 = vmul.f32 %v462_v46, %v1467_v24  ;;  %v453_v57 = vadd.f32 %v451_v40, %v447_v49  ;;  %v454_v58 = vadd.f32 %v452_v41, %v448_v50  ;;  %v468_v59 = vstv %s1573_s11  ;;  %s1645_s26 = sld [smem:[#allocation2 + $0x63]] }
  0x60   : > { %v1617_v7 = vadd.f32 %v434_v27, %v431_v47  ;;  %v1619_v54 = vadd.f32 %v434_v27, %v432_v48  ;;  %v474_v60 = vstv %s1581_s14  ;;  %v480_v61 = vstv %s1585_s9  ;;  %s1649_s27 = sld [smem:[#allocation2 + $0x38]] }
  0x61   : > { %v486_v62 = vstv %s1591_s15  ;;  %v459_v3 = vadd.f32 %v457_v51, %v453_v57  ;;  %v460_v8 = vadd.f32 %v458_v52, %v454_v58  ;;  %v469_v13 = vmul.f32 %v468_v59, %v1483_v36  ;;  %s1655_s28 = sld [smem:[#allocation2 + $0x39]] }
  0x62   : > { %v437_v63 = vmax.f32 %v1617_v7, 0.0  ;;  %v438_v0 = vmax.f32 %v1619_v54, 0.0  ;;  %v470_v14 = vmul.f32 %v468_v59, %v1485_v37  ;;  %v475_v15 = vmul.f32 %v474_v60, %v1501_v5  ;;  %s1659_s29 = sld [smem:[#allocation2 + $0x3a]] }
  0x63   : > { %v476_v16 = vmul.f32 %v474_v60, %v1503_v6  ;;  %v465_v17 = vadd.f32 %v463_v53, %v459_v3  ;;  %v466_v19 = vadd.f32 %v464_v4, %v460_v8  ;;  %v481_v21 = vmul.f32 %v480_v61, %v1517_v1  ;;  %s1663_s30 = sld [smem:[#allocation2 + $0x3b]] }
  0x64   : > { %v482_v22 = vmul.f32 %v480_v61, %v1519_v2  ;;  %v492_v25 = vstv %s1595_s17  ;;  %v496_v26 = vstv %s1601_s19  ;;  %v502_v27 = vstv %s1605_s20  ;;  %s1667_s3 = sld [smem:[#allocation2 + $0x3c]] }
  0x65   : > { %v508_v29 = vstv %s1611_s21  ;;  %v471_v30 = vadd.f32 %v469_v13, %v465_v17  ;;  %v472_v31 = vadd.f32 %v470_v14, %v466_v19  ;;  %v493_v32 = vmul.f32 %v492_v25, %v1392_v28  ;;  %s1671_s5 = sld [smem:[#allocation2 + $0x3d]] }
  0x66   : > { %v494_v33 = vmul.f32 %v492_v25, %v1410_v43  ;;  %v497_v34 = vmul.f32 %v496_v26, %v1412_v44  ;;  %v498_v35 = vmul.f32 %v496_v26, %v1414_v45  ;;  %v503_v38 = vmul.f32 %v502_v27, %v1429_v55  ;;  %s1679_s6 = sld [smem:[#allocation2 + $0x3e]] }
  0x67   : > { %v504_v39 = vmul.f32 %v502_v27, %v1431_v56  ;;  %v477_v40 = vadd.f32 %v475_v15, %v471_v30  ;;  %v478_v41 = vadd.f32 %v476_v16, %v472_v31  ;;  %v509_v42 = vmul.f32 %v508_v29, %v1449_v11  ;;  %s1683_s7 = sld [smem:[#allocation2 + $0x3f]] }
  0x68   : > { %v510_v46 = vmul.f32 %v508_v29, %v1451_v12  ;;  %v499_v47 = vadd.f32 %v497_v34, %v493_v32  ;;  %v500_v48 = vadd.f32 %v498_v35, %v494_v33  ;;  %v514_v49 = vstv %s1621_s22  ;;  %s1689_s8 = sld [smem:[#allocation2 + $0x64]] }
  0x69   : > { %v520_v50 = vstv %s1627_s23  ;;  %v483_v51 = vadd.f32 %v481_v21, %v477_v40  ;;  %v484_v52 = vadd.f32 %v482_v22, %v478_v41  ;;  %v515_v53 = vmul.f32 %v514_v49, %v1465_v23  ;;  %s1699_s11 = sld [smem:[#allocation2 + $0x40]] }
  0x6a   : > { %v516_v4 = vmul.f32 %v514_v49, %v1467_v24  ;;  %v505_v57 = vadd.f32 %v503_v38, %v499_v47  ;;  %v506_v58 = vadd.f32 %v504_v39, %v500_v48  ;;  %v521_v59 = vmul.f32 %v520_v50, %v1483_v36  ;;  %s1705_s14 = sld [smem:[#allocation2 + $0x41]] }
  0x6b   : > { %v522_v60 = vmul.f32 %v520_v50, %v1485_v37  ;;  %v1673_v61 = vadd.f32 %v486_v62, %v483_v51  ;;  %v1675_v3 = vadd.f32 %v486_v62, %v484_v52  ;;  %v526_v8 = vstv %s1635_s24  ;;  %s1707_s9 = sld [smem:[#allocation2 + $0x42]] }
  0x6c   : > { %v532_v13 = vstv %s1639_s25  ;;  %v511_v14 = vadd.f32 %v509_v42, %v505_v57  ;;  %v512_v15 = vadd.f32 %v510_v46, %v506_v58  ;;  %v527_v16 = vmul.f32 %v526_v8, %v1501_v5  ;;  %s1713_s15 = sld [smem:[#allocation2 + $0x43]] }
  0x6d   : > { %v528_v17 = vmul.f32 %v526_v8, %v1503_v6  ;;  %v489_v19 = vmax.f32 %v1673_v61, 0.0  ;;  %v490_v62 = vmax.f32 %v1675_v3, 0.0  ;;  %v533_v21 = vmul.f32 %v532_v13, %v1517_v1  ;;  %s1719_s17 = sld [smem:[#allocation2 + $0x44]] }
  0x6e   : > { %v534_v22 = vmul.f32 %v532_v13, %v1519_v2  ;;  %v517_v25 = vadd.f32 %v515_v53, %v511_v14  ;;  %v518_v26 = vadd.f32 %v516_v4, %v512_v15  ;;  %v538_v27 = vstv %s1645_s26  ;;  %s1725_s19 = sld [smem:[#allocation2 + $0x45]] }
  0x6f   : > { %v544_v29 = vstv %s1649_s27  ;;  %v548_v32 = vstv %s1655_s28  ;;  %v554_v33 = vstv %s1659_s29  ;;  %v560_v42 = vstv %s1663_s30  ;;  %s1731_s20 = sld [smem:[#allocation2 + $0x46]] }
  0x70   : > { %v545_v30 = vmul.f32 %v544_v29, %v1392_v28  ;;  %v546_v31 = vmul.f32 %v544_v29, %v1410_v43  ;;  %v523_v34 = vadd.f32 %v521_v59, %v517_v25  ;;  %v524_v35 = vadd.f32 %v522_v60, %v518_v26  ;;  %s1735_s21 = sld [smem:[#allocation2 + $0x47]] }
  0x71   : > { %v549_v38 = vmul.f32 %v548_v32, %v1412_v44  ;;  %v550_v39 = vmul.f32 %v548_v32, %v1414_v45  ;;  %v555_v40 = vmul.f32 %v554_v33, %v1429_v55  ;;  %v556_v41 = vmul.f32 %v554_v33, %v1431_v56  ;;  %s1741_s22 = sld [smem:[#allocation2 + $0x65]] }
  0x72   : > { %v566_v46 = vstv %s1667_s3  ;;  %v529_v47 = vadd.f32 %v527_v16, %v523_v34  ;;  %v530_v48 = vadd.f32 %v528_v17, %v524_v35  ;;  %v561_v51 = vmul.f32 %v560_v42, %v1449_v11  ;;  %s1745_s23 = sld [smem:[#allocation2 + $0x48]] }
  0x73   : > { %v551_v49 = vadd.f32 %v549_v38, %v545_v30  ;;  %v552_v50 = vadd.f32 %v550_v39, %v546_v31  ;;  %v562_v52 = vmul.f32 %v560_v42, %v1451_v12  ;;  %v567_v53 = vmul.f32 %v566_v46, %v1465_v23  ;;  %s1751_s24 = sld [smem:[#allocation2 + $0x49]] }
  0x74   : > { %v568_v4 = vmul.f32 %v566_v46, %v1467_v24  ;;  %v535_v57 = vadd.f32 %v533_v21, %v529_v47  ;;  %v536_v58 = vadd.f32 %v534_v22, %v530_v48  ;;  %v572_v8 = vstv %s1671_s5  ;;  %s1755_s25 = sld [smem:[#allocation2 + $0x4a]] }
  0x75   : > { %v557_v59 = vadd.f32 %v555_v40, %v551_v49  ;;  %v558_v60 = vadd.f32 %v556_v41, %v552_v50  ;;  %v578_v13 = vstv %s1679_s6  ;;  %v584_v14 = vstv %s1683_s7  ;;  %s1761_s26 = sld [smem:[#allocation2 + $0x4b]] }
  0x76   : > { %v590_v15 = vstv %s1689_s8  ;;  %v1721_v16 = vadd.f32 %v538_v27, %v535_v57  ;;  %v1723_v17 = vadd.f32 %v538_v27, %v536_v58  ;;  %v573_v21 = vmul.f32 %v572_v8, %v1483_v36  ;;  %s1765_s27 = sld [smem:[#allocation2 + $0x4c]] }
  0x77   : > { %v563_v25 = vadd.f32 %v561_v51, %v557_v59  ;;  %v564_v26 = vadd.f32 %v562_v52, %v558_v60  ;;  %v574_v22 = vmul.f32 %v572_v8, %v1485_v37  ;;  %v579_v29 = vmul.f32 %v578_v13, %v1501_v5  ;;  %s1773_s28 = sld [smem:[#allocation2 + $0x4d]] }
  0x78   : > { %v580_v30 = vmul.f32 %v578_v13, %v1503_v6  ;;  %v541_v31 = vmax.f32 %v1721_v16, 0.0  ;;  %v542_v27 = vmax.f32 %v1723_v17, 0.0  ;;  %v585_v34 = vmul.f32 %v584_v14, %v1517_v1  ;;  %s1777_s29 = sld [smem:[#allocation2 + $0x4e]] }
  0x79   : > { %v569_v32 = vadd.f32 %v567_v53, %v563_v25  ;;  %v570_v33 = vadd.f32 %v568_v4, %v564_v26  ;;  %v586_v35 = vmul.f32 %v584_v14, %v1519_v2  ;;  %v596_v38 = vstv %s1699_s11  ;;  %s1783_s30 = sld [smem:[#allocation2 + $0x4f]] }
  0x7a   : > { %v600_v39 = vstv %s1705_s14  ;;  %v597_v42 = vmul.f32 %v596_v38, %v1392_v28  ;;  %v598_v46 = vmul.f32 %v596_v38, %v1410_v43  ;;  %v606_v49 = vstv %s1707_s9  ;;  %s1787_s3 = sld [smem:[#allocation2 + $0x66]] }
  0x7b   : > { %v575_v40 = vadd.f32 %v573_v21, %v569_v32  ;;  %v576_v41 = vadd.f32 %v574_v22, %v570_v33  ;;  %v601_v47 = vmul.f32 %v600_v39, %v1412_v44  ;;  %v602_v48 = vmul.f32 %v600_v39, %v1414_v45  ;;  %s1793_s5 = sld [smem:[#allocation2 + $0x50]] }
  0x7c   : > { %v612_v50 = vstv %s1713_s15  ;;  %v607_v53 = vmul.f32 %v606_v49, %v1429_v55  ;;  %v608_v4 = vmul.f32 %v606_v49, %v1431_v56  ;;  %v618_v14 = vstv %s1719_s17  ;;  %s1797_s6 = sld [smem:[#allocation2 + $0x51]] }
  0x7d   : > { %v581_v51 = vadd.f32 %v579_v29, %v575_v40  ;;  %v582_v52 = vadd.f32 %v580_v30, %v576_v41  ;;  %v603_v57 = vadd.f32 %v601_v47, %v597_v42  ;;  %v604_v58 = vadd.f32 %v602_v48, %v598_v46  ;;  %s1803_s7 = sld [smem:[#allocation2 + $0x52]] }
  0x7e   : > { %v613_v59 = vmul.f32 %v612_v50, %v1449_v11  ;;  %v614_v60 = vmul.f32 %v612_v50, %v1451_v12  ;;  %v624_v25 = vstv %s1725_s19  ;;  %v619_v22 = vmul.f32 %v618_v14, %v1465_v23  ;;  %s1807_s8 = sld [smem:[#allocation2 + $0x53]] }
  0x7f   : > { %v587_v8 = vadd.f32 %v585_v34, %v581_v51  ;;  %v588_v13 = vadd.f32 %v586_v35, %v582_v52  ;;  %v609_v26 = vadd.f32 %v607_v53, %v603_v57  ;;  %v610_v21 = vadd.f32 %v608_v4, %v604_v58  ;;  %s1815_s11 = sld [smem:[#allocation2 + $0x54]] }
  0x80   : > { %v620_v29 = vmul.f32 %v618_v14, %v1467_v24  ;;  %v625_v33 = vmul.f32 %v624_v25, %v1483_v36  ;;  %v626_v34 = vmul.f32 %v624_v25, %v1485_v37  ;;  %v630_v39 = vstv %s1731_s20  ;;  %s1823_s14 = sld [smem:[#allocation2 + $0x55]] }
  0x81   : > { %v1767_v30 = vadd.f32 %v590_v15, %v587_v8  ;;  %v1769_v32 = vadd.f32 %v590_v15, %v588_v13  ;;  %v615_v35 = vadd.f32 %v613_v59, %v609_v26  ;;  %v616_v38 = vadd.f32 %v614_v60, %v610_v21  ;;  %s1831_s9 = sld [smem:[#allocation2 + $0x56]] }
  0x82   : > { %v636_v40 = vstv %s1735_s21  ;;  %v631_v42 = vmul.f32 %v630_v39, %v1501_v5  ;;  %v632_v46 = vmul.f32 %v630_v39, %v1503_v6  ;;  %v642_v51 = vstv %s1741_s22  ;;  %s1835_s15 = sld [smem:[#allocation2 + $0x57]] }
  0x83   : > { %v593_v41 = vmax.f32 %v1767_v30, 0.0  ;;  %v594_v15 = vmax.f32 %v1769_v32, 0.0  ;;  %v621_v47 = vadd.f32 %v619_v22, %v615_v35  ;;  %v622_v48 = vadd.f32 %v620_v29, %v616_v38  ;;  %s1841_s17 = sld [smem:[#allocation2 + $0x67]] }
  0x84   : > { %v637_v49 = vmul.f32 %v636_v40, %v1517_v1  ;;  %v638_v50 = vmul.f32 %v636_v40, %v1519_v2  ;;  %v648_v52 = vstv %s1745_s23  ;;  %v652_v53 = vstv %s1751_s24  ;;  %s1845_s19 = sld [smem:[#allocation2 + $0x58]] }
  0x85   : > { %v658_v4 = vstv %s1755_s25  ;;  %v627_v57 = vadd.f32 %v625_v33, %v621_v47  ;;  %v628_v58 = vadd.f32 %v626_v34, %v622_v48  ;;  %v649_v59 = vmul.f32 %v648_v52, %v1392_v28  ;;  %s1851_s20 = sld [smem:[#allocation2 + $0x59]] }
  0x86   : > { %v650_v60 = vmul.f32 %v648_v52, %v1410_v43  ;;  %v653_v8 = vmul.f32 %v652_v53, %v1412_v44  ;;  %v654_v13 = vmul.f32 %v652_v53, %v1414_v45  ;;  %v659_v14 = vmul.f32 %v658_v4, %v1429_v55  ;;  %s1855_s21 = sld [smem:[#allocation2 + $0x5a]] }
  0x87   : > { %v660_v25 = vmul.f32 %v658_v4, %v1431_v56  ;;  %v633_v26 = vadd.f32 %v631_v42, %v627_v57  ;;  %v634_v21 = vadd.f32 %v632_v46, %v628_v58  ;;  %v664_v22 = vstv %s1761_s26  ;;  %s1859_s22 = sld [smem:[#allocation2 + $0x5b]] }
  0x88   : > { %v670_v29 = vstv %s1765_s27  ;;  %v655_v33 = vadd.f32 %v653_v8, %v649_v59  ;;  %v656_v34 = vadd.f32 %v654_v13, %v650_v60  ;;  %v665_v35 = vmul.f32 %v664_v22, %v1449_v11  ;;  %s1863_s23 = sld [smem:[#allocation2 + $0x5c]] }
  0x89   : > { %v666_v38 = vmul.f32 %v664_v22, %v1451_v12  ;;  %v639_v39 = vadd.f32 %v637_v49, %v633_v26  ;;  %v640_v40 = vadd.f32 %v638_v50, %v634_v21  ;;  %v671_v47 = vmul.f32 %v670_v29, %v1465_v23  ;;  %s1867_s24 = sld [smem:[#allocation2 + $0x5d]] }
  0x8a   : > { %v672_v48 = vmul.f32 %v670_v29, %v1467_v24  ;;  %v661_v52 = vadd.f32 %v659_v14, %v655_v33  ;;  %v662_v42 = vadd.f32 %v660_v25, %v656_v34  ;;  %v676_v46 = vstv %s1773_s28  ;;  %s1875_s25 = sld [smem:[#allocation2 + $0x5e]] }
  0x8b   : > { %v682_v53 = vstv %s1777_s29  ;;  %v1817_v4 = vadd.f32 %v642_v51, %v639_v39  ;;  %v1819_v57 = vadd.f32 %v642_v51, %v640_v40  ;;  %v677_v58 = vmul.f32 %v676_v46, %v1483_v36  ;;  %s1879_s26 = sld [smem:[#allocation2 + $0x5f]] }
  0x8c   : > { %v678_v49 = vmul.f32 %v676_v46, %v1485_v37  ;;  %v667_v50 = vadd.f32 %v665_v35, %v661_v52  ;;  %v668_v59 = vadd.f32 %v666_v38, %v662_v42  ;;  %v683_v60 = vmul.f32 %v682_v53, %v1501_v5  ;;  %s1885_s27 = sld [smem:[#allocation2 + $0x68]] }
  0x8d   : > { %v684_v8 = vmul.f32 %v682_v53, %v1503_v6  ;;  %v645_v13 = vmax.f32 %v1817_v4, 0.0  ;;  %v688_v14 = vstv %s1783_s30  ;;  %v694_v25 = vstv %s1787_s3  ;;  %s1895_s28 = sld [smem:[#allocation2 + $0x69]] }
  0x8e   : > { %v673_v26 = vadd.f32 %v671_v47, %v667_v50  ;;  %v674_v21 = vadd.f32 %v672_v48, %v668_v59  ;;  %v689_v22 = vmul.f32 %v688_v14, %v1517_v1  ;;  %v690_v29 = vmul.f32 %v688_v14, %v1519_v2  ;;  %s1901_s29 = sld [smem:[#allocation2 + $0x6a]] }
  0x8f   : > { %v700_v33 = vstv %s1793_s5  ;;  %v704_v34 = vstv %s1797_s6  ;;  %v710_v35 = vstv %s1803_s7  ;;  %v716_v38 = vstv %s1807_s8  ;;  %s1903_s30 = sld [smem:[#allocation2 + $0x6b]] }
  0x90   : > { %v679_v39 = vadd.f32 %v677_v58, %v673_v26  ;;  %v680_v40 = vadd.f32 %v678_v49, %v674_v21  ;;  %v701_v52 = vmul.f32 %v700_v33, %v1392_v28  ;;  %v702_v47 = vmul.f32 %v700_v33, %v1410_v43  ;;  %s1909_s3 = sld [smem:[#allocation2 + $0x6c]] }
  0x91   : > { %v705_v48 = vmul.f32 %v704_v34, %v1412_v44  ;;  %v706_v42 = vmul.f32 %v704_v34, %v1414_v45  ;;  %v711_v46 = vmul.f32 %v710_v35, %v1429_v55  ;;  %v712_v53 = vmul.f32 %v710_v35, %v1431_v56  ;;  %s1915_s5 = sld [smem:[#allocation2 + $0x6d]] }
  0x92   : > { %v685_v58 = vadd.f32 %v683_v60, %v679_v39  ;;  %v686_v49 = vadd.f32 %v684_v8, %v680_v40  ;;  %v717_v50 = vmul.f32 %v716_v38, %v1449_v11  ;;  %v718_v59 = vmul.f32 %v716_v38, %v1451_v12  ;;  %s1921_s6 = sld [smem:[#allocation2 + $0x6e]] }
  0x93   : > { %v707_v14 = vadd.f32 %v705_v48, %v701_v52  ;;  %v708_v26 = vadd.f32 %v706_v42, %v702_v47  ;;  %v722_v21 = vstv %s1815_s11  ;;  %v728_v33 = vstv %s1823_s14  ;;  %s1927_s7 = sld [smem:[#allocation2 + $0x6f]] }
  0x94   : > { %v691_v34 = vadd.f32 %v689_v22, %v685_v58  ;;  %v692_v35 = vadd.f32 %v690_v29, %v686_v49  ;;  %v723_v51 = vmul.f32 %v722_v21, %v1465_v23  ;;  %v724_v60 = vmul.f32 %v722_v21, %v1467_v24  ;;  %s1931_s8 = sld [smem:[#allocation2 + $0x70]] }
  0x95   : > { %v713_v8 = vadd.f32 %v711_v46, %v707_v14  ;;  %v714_v38 = vadd.f32 %v712_v53, %v708_v26  ;;  %v729_v39 = vmul.f32 %v728_v33, %v1483_v36  ;;  %v730_v40 = vmul.f32 %v728_v33, %v1485_v37  ;;  %s1937_s11 = sld [smem:[#allocation2 + $0x71]] }
  0x96   : > { %v1869_v52 = vadd.f32 %v694_v25, %v691_v34  ;;  %v1871_v47 = vadd.f32 %v694_v25, %v692_v35  ;;  %v734_v22 = vstv %s1831_s9  ;;  %v740_v29 = vstv %s1835_s15  ;;  %s1943_s14 = sld [smem:[#allocation2 + $0x7b]] }
  0x97   : > { %v719_v48 = vadd.f32 %v717_v50, %v713_v8  ;;  %v720_v42 = vadd.f32 %v718_v59, %v714_v38  ;;  %v735_v46 = vmul.f32 %v734_v22, %v1501_v5  ;;  %v736_v53 = vmul.f32 %v734_v22, %v1503_v6  ;;  %s1951_s9 = sld [smem:[#allocation2 + $0x72]] }
  0x98   : > { %v697_v58 = vmax.f32 %v1869_v52, 0.0  ;;  %v741_v49 = vmul.f32 %v740_v29, %v1517_v1  ;;  %v742_v14 = vmul.f32 %v740_v29, %v1519_v2  ;;  %v746_v26 = vstv %s1841_s17  ;;  %s1957_s15 = sld [smem:[#allocation2 + $0x73]] }
  0x99   : > { %v725_v50 = vadd.f32 %v723_v51, %v719_v48  ;;  %v726_v59 = vadd.f32 %v724_v60, %v720_v42  ;;  %v752_v21 = vstv %s1845_s19  ;;  %v756_v35 = vstv %s1851_s20  ;;  %s1965_s17 = sld [smem:[#allocation2 + $0x74]] }
  0x9a   : > { %v753_v33 = vmul.f32 %v752_v21, %v1392_v28  ;;  %v754_v34 = vmul.f32 %v752_v21, %v1410_v43  ;;  %v762_v8 = vstv %s1855_s21  ;;  %v757_v25 = vmul.f32 %v756_v35, %v1412_v44  ;;  %s1971_s19 = sld [smem:[#allocation2 + $0x75]] }
  0x9b   : > { %v731_v38 = vadd.f32 %v729_v39, %v725_v50  ;;  %v732_v22 = vadd.f32 %v730_v40, %v726_v59  ;;  %v758_v29 = vmul.f32 %v756_v35, %v1414_v45  ;;  %v763_v51 = vmul.f32 %v762_v8, %v1429_v55  ;;  %s1983_s20 = sld [smem:[#allocation2 + $0x76]] }
  0x9c   : > { %v764_v60 = vmul.f32 %v762_v8, %v1431_v56  ;;  %v768_v48 = vstv %s1859_s22  ;;  %v774_v42 = vstv %s1863_s23  ;;  %v759_v39 = vadd.f32 %v757_v25, %v753_v33  ;;  %s1991_s21 = sld [smem:[#allocation2 + $0x77]] }
  0x9d   : > { %v737_v28 = vadd.f32 %v735_v46, %v731_v38  ;;  %v738_v43 = vadd.f32 %v736_v53, %v732_v22  ;;  %v760_v44 = vadd.f32 %v758_v29, %v754_v34  ;;  %v769_v45 = vmul.f32 %v768_v48, %v1449_v11  ;;  %s2001_s22 = sld [smem:[#allocation2 + $0x78]] }
  0x9e   : > { %v770_v55 = vmul.f32 %v768_v48, %v1451_v12  ;;  %v775_v56 = vmul.f32 %v774_v42, %v1465_v23  ;;  %v776_v40 = vmul.f32 %v774_v42, %v1467_v24  ;;  %v765_v46 = vadd.f32 %v763_v51, %v759_v39  ;;  %s2007_s23 = sld [smem:[#allocation2 + $0x79]] }
  0x9f   : > { %v743_v50 = vadd.f32 %v741_v49, %v737_v28  ;;  %v744_v59 = vadd.f32 %v742_v14, %v738_v43  ;;  %v766_v21 = vadd.f32 %v764_v60, %v760_v44  ;;  %v780_v53 = vstv %s1867_s24  ;;  %s2019_s24 = sld [smem:[#allocation2 + $0x7a]] }
  0xa0   : > { %v786_v35 = vstv %s1875_s25  ;;  %v792_v25 = vstv %s1879_s26  ;;  %v798_v33 = vstv %s1885_s27  ;;  %v771_v12 = vadd.f32 %v769_v45, %v765_v46  ;;  %s1180_s25 = sld [smem:[#allocation2 + $0x7c]]  ;;  %s199_s26 = scalar_lea.vmem [#allocation5], %s1352_s4 }
  0xa1   : > { %v1917_v34 = vadd.f32 %v746_v26, %v743_v50  ;;  %v1919_v11 = vadd.f32 %v746_v26, %v744_v59  ;;  %v772_v23 = vadd.f32 %v770_v55, %v766_v21  ;;  %v781_v24 = vmul.f32 %v780_v53, %v1483_v36  ;;  %s1189_s4 = sshll.u32 (%p1319_p5), %s1300_s12, 4 }
  0xa2   : > { %v782_v49 = vmul.f32 %v780_v53, %v1485_v37  ;;  %v787_v14 = vmul.f32 %v786_v35, %v1501_v5  ;;  %v788_v8 = vmul.f32 %v786_v35, %v1503_v6  ;;  %v777_v22 = vadd.f32 %v775_v56, %v771_v12 }
  0xa3   : > { %v749_v38 = vmax.f32 %v1917_v34, 0.0  ;;  %v750_v26 = vmax.f32 %v1919_v11, 0.0  ;;  %v778_v29 = vadd.f32 %v776_v40, %v772_v23  ;;  %v793_v36 = vmul.f32 %v792_v25, %v1517_v1 }
  0xa4   : > { %v794_v37 = vmul.f32 %v792_v25, %v1519_v2  ;;  %v804_v51 = vstv %s1895_s28  ;;  %v808_v5 = vstv %s1901_s29  ;;  %v783_v6 = vadd.f32 %v781_v24, %v777_v22  ;;  %s929_s29 = scalar_lea.vmem (%p1319_p5), %s2073_s2, %s1189_s4 }
  0xa5   : > { %v784_v60 = vadd.f32 %v782_v49, %v778_v29  ;;  %v805_v48 = vmul.f32 %v804_v51, %v385_v20  ;;  %v806_v42 = vmul.f32 %v804_v51, %v386_v18  ;;  %v809_v28 = vmul.f32 %v808_v5, %v437_v63 }
  0xa6   : > { %v810_v1 = vmul.f32 %v808_v5, %v438_v0  ;;  %v814_v2 = vstv %s1903_s30  ;;  %v820_v43 = vstv %s1909_s3  ;;  %v789_v39 = vadd.f32 %v787_v14, %v783_v6 }
  0xa7   : > { %v790_v44 = vadd.f32 %v788_v8, %v784_v60  ;;  %v815_v45 = vmul.f32 %v814_v2, %v489_v19  ;;  %v816_v55 = vmul.f32 %v814_v2, %v490_v62  ;;  %v811_v56 = vadd.f32 %v809_v28, %v805_v48 }
  0xa8   : > { %v812_v40 = vadd.f32 %v810_v1, %v806_v42  ;;  %v821_v50 = vmul.f32 %v820_v43, %v541_v31  ;;  %v822_v59 = vmul.f32 %v820_v43, %v542_v27  ;;  %v795_v46 = vadd.f32 %v793_v36, %v789_v39 }
  0xa9   : > { %v796_v21 = vadd.f32 %v794_v37, %v790_v44  ;;  %v826_v53 = vstv %s1915_s5  ;;  %v832_v35 = vstv %s1921_s6  ;;  %v817_v25 = vadd.f32 %v815_v45, %v811_v56 }
  0xaa   : > { %v818_v12 = vadd.f32 %v816_v55, %v812_v40  ;;  %v827_v23 = vmul.f32 %v826_v53, %v593_v41  ;;  %v828_v24 = vmul.f32 %v826_v53, %v594_v15  ;;  %v1973_v49 = vadd.f32 %v798_v33, %v795_v46 }
  0xab   : > { %v1975_v14 = vadd.f32 %v798_v33, %v796_v21  ;;  %v833_v8 = vmul.f32 %v832_v35, %v645_v13  ;;  %v2077_v22 = vmax.f32 %v1819_v57, 0.0  ;;  %v823_v36 = vadd.f32 %v821_v50, %v817_v25 }
  0xac   : > { %v824_v37 = vadd.f32 %v822_v59, %v818_v12  ;;  %v838_v51 = vstv %s1927_s7  ;;  %v844_v5 = vstv %s1931_s8  ;;  %v801_v6 = vmax.f32 %v1973_v49, 0.0 }
  0xad   : > { %v834_v29 = vmul.f32 %v832_v35, %v2077_v22  ;;  %v802_v33 = vmax.f32 %v1975_v14, 0.0  ;;  %v839_v60 = vmul.f32 %v838_v51, %v697_v58  ;;  %v2078_v48 = vmax.f32 %v1871_v47, 0.0 }
  0xae   : > { %v829_v28 = vadd.f32 %v827_v23, %v823_v36  ;;  %v830_v1 = vadd.f32 %v828_v24, %v824_v37  ;;  %v845_v2 = vmul.f32 %v844_v5, %v749_v38  ;;  %v846_v43 = vmul.f32 %v844_v5, %v750_v26 }
  0xaf   : > { %v840_v42 = vmul.f32 %v838_v51, %v2078_v48  ;;  %v850_v39 = vstv %s1937_s11  ;;  %v856_v44 = vstv %s1943_s14  ;;  %v860_v45 = vstv %s1951_s9 }
  0xb0   : > { %v864_v55 = vstv %s1957_s15  ;;  %v835_v56 = vadd.f32 %v833_v8, %v829_v28  ;;  %v836_v40 = vadd.f32 %v834_v29, %v830_v1  ;;  %v851_v50 = vmul.f32 %v850_v39, %v801_v6 }
  0xb1   : > { %v852_v59 = vmul.f32 %v850_v39, %v802_v33  ;;  %v861_v46 = vmul.f32 %v860_v45, %v385_v20  ;;  %v862_v21 = vmul.f32 %v860_v45, %v386_v18  ;;  %v865_v53 = vmul.f32 %v864_v55, %v437_v63 }
  0xb2   : > { %v866_v35 = vmul.f32 %v864_v55, %v438_v0  ;;  %v841_v25 = vadd.f32 %v839_v60, %v835_v56  ;;  %v842_v12 = vadd.f32 %v840_v42, %v836_v40  ;;  %v870_v23 = vstv %s1965_s17 }
  0xb3   : > { %v876_v24 = vstv %s1971_s19  ;;  %v867_v8 = vadd.f32 %v865_v53, %v861_v46  ;;  %v871_v10 = vmul.f32 %v870_v23, %v489_v19  ;;  %v872_v20 = vmul.f32 %v870_v23, %v490_v62 }
  0xb4   : > { %v868_v9 = vadd.f32 %v866_v35, %v862_v21  ;;  %v847_v18 = vadd.f32 %v845_v2, %v841_v25  ;;  %v848_v7 = vadd.f32 %v846_v43, %v842_v12  ;;  %v877_v54 = vmul.f32 %v876_v24, %v541_v31 }
  0xb5   : > { %v878_v63 = vmul.f32 %v876_v24, %v542_v27  ;;  %v873_v0 = vadd.f32 %v871_v10, %v867_v8  ;;  %v882_v29 = vstv %s1983_s20  ;;  %v888_v36 = vstv %s1991_s21 }
  0xb6   : > { %v874_v22 = vadd.f32 %v872_v20, %v868_v9  ;;  %v853_v37 = vadd.f32 %v851_v50, %v847_v18  ;;  %v854_v61 = vadd.f32 %v852_v59, %v848_v7  ;;  %v883_v3 = vmul.f32 %v882_v29, %v593_v41 }
  0xb7   : > { %v884_v19 = vmul.f32 %v882_v29, %v594_v15  ;;  %v879_v62 = vadd.f32 %v877_v54, %v873_v0  ;;  %v889_v17 = vmul.f32 %v888_v36, %v645_v13  ;;  %v2079_v31 = vmax.f32 %v1819_v57, 0.0 }
  0xb8   : > { %v880_v16 = vadd.f32 %v878_v63, %v874_v22  ;;  %v857_v51 = vadd.f32 %v856_v44, %v853_v37  ;;  %v858_v5 = vadd.f32 %v856_v44, %v854_v61  ;;  %v894_v60 = vstv %s2001_s22 }
  0xb9   : > { %v890_v27 = vmul.f32 %v888_v36, %v2079_v31  ;;  %v900_v48 = vstv %s2007_s23  ;;  %v885_v30 = vadd.f32 %v883_v3, %v879_v62  ;;  %v895_v32 = vmul.f32 %v894_v60, %v697_v58 }
  0xba   : > { %v886_v42 = vadd.f32 %v884_v19, %v880_v16  ;;  %v2080_v41 = vmax.f32 %v1871_v47, 0.0  ;;  %v906_v28 = vstv %s2019_s24  ;;  %915 = vst [vmem:[%s199_s26] sm:$0xff] %v857_v51  ;;  %v901_v57 = vmul.f32 %v900_v48, %v749_v38 }
  0xbb   : > { %v891_v4 = vadd.f32 %v889_v17, %v885_v30  ;;  %v902_v1 = vmul.f32 %v900_v48, %v750_v26  ;;  %916 = vst [vmem:[%s199_s26 + $0x8] sm:$0xff] %v858_v5  ;;  %v907_v52 = vmul.f32 %v906_v28, %v801_v6  ;;  %v908_v47 = vmul.f32 %v906_v28, %v802_v33 }
  0xbc   : > { %v896_v15 = vmul.f32 %v894_v60, %v2080_v41  ;;  %v892_v13 = vadd.f32 %v890_v27, %v886_v42  ;;  %v912_v44 = vstv %s1180_s25 }
  0xbd   : > { %v897_v2 = vadd.f32 %v895_v32, %v891_v4 }
  0xbe   : > { %v898_v43 = vadd.f32 %v896_v15, %v892_v13 }
  0xbf   : > { %v903_v58 = vadd.f32 %v901_v57, %v897_v2 }
  0xc0   : > { %v904_v39 = vadd.f32 %v902_v1, %v898_v43 }
  0xc1   : > { %v909_v45 = vadd.f32 %v907_v52, %v903_v58  ;;  %v964_v11 = vld [vmem:[%s199_s26] sm:$0xff] (%p1319_p5) }
  0xc2   : > { %v910_v55 = vadd.f32 %v908_v47, %v904_v39  ;;  %926 = sbr.rel (!%p1319_p5) target bundleno = 207 (0xcf), region = 74  ;;  %v966_v38 = vld [vmem:[%s199_s26 + $0x8] sm:$0xff] (%p1319_p5)  ;;  %965 = vst [vmem:[%s929_s29] sm:$0xff] (%p1319_p5), %v964_v11 }
  0xc3   : > { %v913_v56 = vadd.f32 %v912_v44, %v909_v45  ;;  %967 = vst [vmem:[%s929_s29 + $0x8] sm:$0xff] (%p1319_p5), %v966_v38 }
  0xc4   : > { %v914_v34 = vadd.f32 %v912_v44, %v910_v55 }
  0xc5   : > { %1181 = vst [vmem:[%s199_s26 + $0x10] sm:$0xff] %v913_v56 }
  0xc6   : > { %1182 = vst [vmem:[%s199_s26 + $0x18] sm:$0xff] %v914_v34 }
  0xcc   : > { %v968_v26 = vld [vmem:[%s199_s26 + $0x10] sm:$0xff] }
  0xcd   : > { %v970_v49 = vld [vmem:[%s199_s26 + $0x18] sm:$0xff]  ;;  %969 = vst [vmem:[%s929_s29 + $0x20] sm:$0xff] %v968_v26 }
  0xce   : > { %971 = vst [vmem:[%s929_s29 + $0x28] sm:$0xff] %v970_v49 }
  0xcf PF: > { %p10_p13 = scmp.ge.s32.totalorder %s1303_s13, 4   ;;  %s2081_s9 = smov %s1262_s10 }
  0xd0   : > { %s2082_s10 = smov %s1313_s16  ;;  %s2083_s11 = smov %s1303_s13 }
  0xd1   :  { %12 = sbr.rel (!%p10_p13) target bundleno = 2 (0x2), region = 146 }
  0xd6   :  { %987 = vsyncpa [#allocation3], 1 }
  0xd7   :  { %989 = vsyncpa [#allocation3 + $0x1], 1 }

</bundles_post_ra>
